<compile_context>
chip_gen: v7x
topology: tpu7x:2x2x1
jax: 0.10.0
libtpu: 0.0.40
codegen_flags: <defaults>
</compile_context>

<pallas_src>
import functools

import numpy as np
import jax
import jax.numpy as jnp
from jax.experimental import pallas as pl
from jax.experimental.pallas import tpu as pltpu


# ----------------------------------------------------------------------------
# Helpers
# ----------------------------------------------------------------------------
def _round_up(x, m):
    return (x + m - 1) // m * m


def _choose_m_tile(Mp):
    """Mp is a multiple of 128.  Largest tile in {512, 256, 128} that yields >=2 blocks
    (so the 'parallel' axis can shard across TensorCores); otherwise Mp itself (only
    hit when Mp == 128).  Block size never scales with batch."""
    for tm in (512, 256, 128):
        if Mp % tm == 0 and Mp // tm >= 2:
            return tm
    return Mp


# ----------------------------------------------------------------------------
# Pallas kernel 1: single-shot matmul with fused bias + activation (MXU)
# ----------------------------------------------------------------------------
def _matmul_bias_act_kernel(p_ref, w_ref, b_ref, o_ref, *, act):
    # (Cout, K) @ (K, tm) -> f32 accumulation on the MXU.  K is the fully folded
    # contraction (Cin * taps); M sits on the lane axis (full-lane vst).
    r = jnp.dot(w_ref[...], p_ref[...], preferred_element_type=jnp.float32)
    r = r + b_ref[...]                       # (Cout, tm) + (Cout, 1)
    if act == "relu":
        r = jnp.maximum(r, 0.0)
    elif act == "silu":
        r = r * jax.nn.sigmoid(r)
    o_ref[...] = r.astype(o_ref.dtype)


def matmul_bias_act(P, W, b, *, act="none"):
    """out = act(W @ P + b[:, None]).  P: (K, M), W: (Cout, K), b: (Cout,).

    M must be a multiple of 128 (lane-dense stores).  bf16 operands / f32 accumulate.
    No reduction grid axis and no scratch accumulator - one matmul per M tile."""
    K, M = P.shape
    Cout = W.shape[0]
    assert W.shape == (Cout, K) and b.shape == (Cout,) and M % 128 == 0
    tm = _choose_m_tile(M)
    P = P.astype(jnp.bfloat16)
    W = W.astype(jnp.bfloat16)
    b2 = b.reshape(Cout, 1).astype(jnp.float32)
    kern = functools.partial(_matmul_bias_act_kernel, act=act)
    return pl.pallas_call(
        kern,
        out_shape=jax.ShapeDtypeStruct((Cout, M), jnp.float32),
        grid=(M // tm,),
        in_specs=[
            pl.BlockSpec((K, tm), lambda m: (0, m)),
            pl.BlockSpec((Cout, K), lambda m: (0, 0)),
            pl.BlockSpec((Cout, 1), lambda m: (0, 0)),
        ],
        out_specs=pl.BlockSpec((Cout, tm), lambda m: (0, m)),
        compiler_params=pltpu.CompilerParams(
            dimension_semantics=("parallel",),
        ),
    )(P, W, b2)


# ----------------------------------------------------------------------------
# Pallas kernel 2: 1->1 channel stride-1 conv on the VPU (off the MXU)
# ----------------------------------------------------------------------------
def _conv_1ch_kernel(x_ref, w_ref, b_ref, o_ref, *, kh, kw, Ho, Wo):
    # kh*kw shifted multiply-adds on (N, Ho, Wo) tiles; weights/bias read from SMEM.
    xp = x_ref[...]                                   # (N, Ho+kh-1, Wo+kw-1)
    acc = jnp.zeros(o_ref.shape, jnp.float32) + b_ref[0]
    for dy in range(kh):
        for dx in range(kw):
            acc = acc + w_ref[dy * kw + dx] * xp[:, dy:dy + Ho, dx:dx + Wo]
    o_ref[...] = acc


def conv2d_1ch(x, w, b, *, pad):
    """1->1 channel stride-1 conv.  x: (1, N, H, W), w: (1, 1, kh, kw), b: (1,)."""
    _, N, H, W = x.shape
    kh, kw = int(w.shape[2]), int(w.shape[3])
    Ho = H + 2 * pad - kh + 1
    Wo = W + 2 * pad - kw + 1
    xpad = jnp.pad(x[0], ((0, 0), (pad, pad), (pad, pad))).astype(jnp.float32)
    kern = functools.partial(_conv_1ch_kernel, kh=kh, kw=kw, Ho=Ho, Wo=Wo)
    out = pl.pallas_call(
        kern,
        out_shape=jax.ShapeDtypeStruct((N, Ho, Wo), jnp.float32),
        in_specs=[
            pl.BlockSpec(memory_space=pltpu.MemorySpace.VMEM),
            pl.BlockSpec(memory_space=pltpu.MemorySpace.SMEM),
            pl.BlockSpec(memory_space=pltpu.MemorySpace.SMEM),
        ],
        out_specs=pl.BlockSpec(memory_space=pltpu.MemorySpace.VMEM),
    )(xpad, w.reshape(kh * kw).astype(jnp.float32), b.astype(jnp.float32))
    return out[None]                                   # (1, N, Ho, Wo)


# ----------------------------------------------------------------------------
# Tap gathering glue (pure indexing on tiny tensors; fused by XLA around the calls)
# ----------------------------------------------------------------------------
def _gather_taps(x, offs, stride, Ho, Wo):
    """x: (C, N, H, W).  offs: list of (dy, dx) tap offsets into the *unpadded* input
    (out-of-range positions read as zero).  Returns (T, C, N*Ho*Wo) with
    P[t, c, n*Ho*Wo + ho*Wo + wo] = x[c, n, stride*ho + dy_t, stride*wo + dx_t]."""
    C, N, H, W = x.shape
    dys = [o[0] for o in offs]
    dxs = [o[1] for o in offs]
    pad_t = max(0, -min(dys))
    pad_b = max(0, stride * (Ho - 1) + max(dys) - (H - 1))
    pad_l = max(0, -min(dxs))
    pad_r = max(0, stride * (Wo - 1) + max(dxs) - (W - 1))
    xp = jnp.pad(x, ((0, 0), (0, 0), (pad_t, pad_b), (pad_l, pad_r)))
    taps = []
    for dy, dx in offs:
        r0 = pad_t + dy
        c0 = pad_l + dx
        taps.append(xp[:, :, r0:r0 + stride * (Ho - 1) + 1:stride,
                          c0:c0 + stride * (Wo - 1) + 1:stride])
    P = jnp.stack(taps, axis=0)                        # (T, C, N, Ho, Wo)
    return P.reshape(len(offs), C, N * Ho * Wo)


# ----------------------------------------------------------------------------
# Conv / ConvTranspose built on the matmul kernel (channel-first layout)
# ----------------------------------------------------------------------------
def conv2d(x, w, b, *, stride, pad, act="none"):
    """x: (Cin, N, H, W), w: (Cout, Cin, kh, kw) -> (Cout, N, Ho, Wo).  One pallas_call."""
    Cout, Cin, kh, kw = w.shape
    C, N, H, W = x.shape
    assert C == Cin
    Ho = (H + 2 * pad - kh) // stride + 1
    Wo = (W + 2 * pad - kw) // stride + 1
    offs = [(i - pad, j - pad) for i in range(kh) for j in range(kw)]
    T = kh * kw
    M = N * Ho * Wo
    Mp = _round_up(M, 128)
    P = _gather_taps(x, offs, stride, Ho, Wo).reshape(T * Cin, M)   # K order (tap, cin)
    if Mp != M:
        P = jnp.pad(P, ((0, 0), (0, Mp - M)))
    Wf = w.transpose(0, 2, 3, 1).reshape(Cout, T * Cin)             # matches (tap, cin)
    out = matmul_bias_act(P, Wf, b, act=act)                        # (Cout, Mp)
    return out[:, :M].reshape(Cout, N, Ho, Wo)


def conv_transpose2d(x, w, b, *, stride, pad, act="none"):
    """PyTorch ConvTranspose2d, channel-first.  x: (Cin, N, H, W), w: (Cin, Cout, kh, kw).

    Sub-pixel decomposition with all s*s parity phases collapsed into ONE matmul:
    phases are stacked along the output-channel (sublane) axis against a union-of-taps
    weight matrix (zero blocks where a phase does not use a tap); the interleave back
    to (Hout, Wout) happens once afterwards."""
    Cin, Cout, kh, kw = w.shape
    C, N, H, W = x.shape
    assert C == Cin
    s = stride
    Hout = (H - 1) * s - 2 * pad + kh
    Wout = (W - 1) * s - 2 * pad + kw
    qy, qx = kh - 1 - pad, kw - 1 - pad              # padding of the equivalent direct conv
    Yb, Xb = -(-Hout // s), -(-Wout // s)            # common (padded) per-phase output grid
    M = N * Yb * Xb
    Mp = _round_up(M, 128)

    def phase_taps(a, q, k):
        # phase a: contributing flipped-kernel indices u = r, r+s, ... map to
        # {input offset (relative to the phase output index): original kernel index}
        r = (q - a) % s
        d = (a + r - q) // s
        return {(i + d): (k - 1 - u) for i, u in enumerate(range(r, k, s))}

    row_taps = [phase_taps(ay, qy, kh) for ay in range(s)]
    col_taps = [phase_taps(ax, qx, kw) for ax in range(s)]
    union_offs = sorted({(oy, ox)
                         for rt in row_taps for oy in rt
                         for ct in col_taps for ox in ct})
    if not union_offs:                                # degenerate (s > k): bias only
        union_offs = [(0, 0)]
    Tu = len(union_offs)

    P = _gather_taps(x, union_offs, 1, Yb, Xb).reshape(Tu * Cin, M)
    if Mp != M:
        P = jnp.pad(P, ((0, 0), (0, Mp - M)))

    # (s*s*Cout, Tu*Cin) weight: phase row-blocks x union-tap column-blocks.
    zero_blk = jnp.zeros((Cout, Cin), w.dtype)
    w_rows = []
    for ay in range(s):
        for ax in range(s):
            blocks = []
            for (oy, ox) in union_offs:
                if oy in row_taps[ay] and ox in col_taps[ax]:
                    ky, kx = row_taps[ay][oy], col_taps[ax][ox]
                    blocks.append(w[:, :, ky, kx].T)               # (Cout, Cin)
                else:
                    blocks.append(zero_blk)
            w_rows.append(jnp.concatenate(blocks, axis=1))         # (Cout, Tu*Cin)
    W_all = jnp.concatenate(w_rows, axis=0)                        # (s*s*Cout, Tu*Cin)
    b_all = jnp.tile(b, s * s)                                     # (s*s*Cout,)

    out = matmul_bias_act(P, W_all, b_all, act=act)                # (s*s*Cout, Mp)
    out = out[:, :M].reshape(s, s, Cout, N, Yb, Xb)
    out = out.transpose(2, 3, 4, 0, 5, 1).reshape(Cout, N, Yb * s, Xb * s)
    return out[:, :, :Hout, :Wout]


# ----------------------------------------------------------------------------
# Parameters (deterministic, synthetic) + sinusoidal time embedding
# ----------------------------------------------------------------------------
def sinusoidal_embedding(n, d):
    emb = np.array([[i / 10000 ** (2 * j / d) for j in range(d)] for i in range(n)],
                   dtype=np.float64)
    sin_mask = np.arange(0, n, 2)
    emb[sin_mask] = np.sin(emb[sin_mask])
    # Reproduces the torch module exactly, including its indexing quirk:
    # `1 - sin_mask` = [1, -1, -3, ...] wraps (negative indices) onto odd rows from
    # the end, and the RHS reads the already-sin()'d even rows -> cos(sin(.)).
    # numpy fancy-index assignment behaves identically to torch here.
    emb[1 - sin_mask] = np.cos(emb[sin_mask])
    return jnp.asarray(emb, dtype=jnp.float32)


def _dense(key, out_f, in_f, scale=0.05):
    k_w, k_b = jax.random.split(key)
    w = scale * jax.random.normal(k_w, (out_f, in_f), jnp.float32)
    b = scale * jax.random.normal(k_b, (out_f,), jnp.float32)
    return w, b


TE_DIMS = (1, 32, 64, 32)                                     # te_1..te_4 widths
TE_SPLITS = tuple(int(v) for v in np.cumsum((0,) + TE_DIMS))  # (0, 1, 33, 97, 129)


def init_params(key, n_steps=1000, time_emb_dim=100):
    ks = jax.random.split(key, 18)
    p = {}
    p["time_embed"] = sinusoidal_embedding(n_steps, time_emb_dim)

    # Packed time-embedding MLPs: first layers concatenated, second layers block-diag.
    w1s, b1s, w2s, b2s = [], [], [], []
    for h, d in enumerate(TE_DIMS):
        w1, b1 = _dense(ks[2 * h], d, time_emb_dim)
        w2, b2 = _dense(ks[2 * h + 1], d, d)
        w1s.append(w1); b1s.append(b1); w2s.append(w2); b2s.append(b2)
    D = sum(TE_DIMS)
    p["te_w1"] = jnp.concatenate(w1s, axis=0)                 # (129, 100)
    p["te_b1"] = jnp.concatenate(b1s, axis=0)                 # (129,)
    w2_blk = jnp.zeros((D, D), jnp.float32)
    off = 0
    for w2 in w2s:
        d = w2.shape[0]
        w2_blk = w2_blk.at[off:off + d, off:off + d].set(w2)
        off += d
    p["te_w2"] = w2_blk                                       # (129, 129) block-diagonal
    p["te_b2"] = jnp.concatenate(b2s, axis=0)                 # (129,)

    p["c1_w"] = 0.05 * jax.random.normal(ks[8], (32, 1, 3, 3), jnp.float32)
    p["c1_b"] = 0.05 * jax.random.normal(ks[9], (32,), jnp.float32)
    p["c2_w"] = 0.05 * jax.random.normal(ks[10], (64, 32, 3, 3), jnp.float32)
    p["c2_b"] = 0.05 * jax.random.normal(ks[11], (64,), jnp.float32)
    p["c3_w"] = 0.05 * jax.random.normal(ks[12], (64, 32, 5, 5), jnp.float32)   # ConvT (Cin, Cout, kh, kw)
    p["c3_b"] = 0.05 * jax.random.normal(ks[13], (32,), jnp.float32)
    p["c4_w"] = 0.05 * jax.random.normal(ks[14], (32, 1, 2, 2), jnp.float32)    # ConvT (Cin, Cout, kh, kw)
    p["c4_b"] = 0.05 * jax.random.normal(ks[15], (1,), jnp.float32)
    p["out_w"] = 0.05 * jax.random.normal(ks[16], (1, 1, 3, 3), jnp.float32)
    p["out_b"] = 0.05 * jax.random.normal(ks[17], (1,), jnp.float32)
    return p


# ----------------------------------------------------------------------------
# ConvNet.forward
# ----------------------------------------------------------------------------
def convnet_forward(p, x, t):
    """x: (N, 1, H, W) NCHW (PyTorch convention), t: (N,) int timesteps -> (N, 1, H, W)."""
    temb = p["time_embed"][t]                                  # (N, 100)
    # Tiny time MLPs (M = batch, <<128 lanes): plain XLA dots; a Pallas call here is
    # pure dispatch overhead + masked stores.
    h = jax.nn.silu(temb @ p["te_w1"].T + p["te_b1"])          # (N, 129)
    te = (h @ p["te_w2"].T + p["te_b2"]).T                     # (129, N)
    s0, s1, s2, s3, s4 = TE_SPLITS
    te1, te2, te3, te4 = te[s0:s1], te[s1:s2], te[s2:s3], te[s3:s4]    # (C_l, N)

    xc = jnp.transpose(x, (1, 0, 2, 3))      # one tiny boundary transpose to (C, N, H, W)
    # The +teN broadcasts are per-sample/per-channel adds that XLA fuses into the
    # subsequent pad/tap-gather pass.
    out = conv2d(xc + te1[:, :, None, None], p["c1_w"], p["c1_b"],
                 stride=2, pad=1, act="relu")
    out = conv2d(out + te2[:, :, None, None], p["c2_w"], p["c2_b"],
                 stride=2, pad=1, act="relu")
    out = conv_transpose2d(out + te3[:, :, None, None], p["c3_w"], p["c3_b"],
                           stride=2, pad=1)
    out = conv_transpose2d(out + te4[:, :, None, None], p["c4_w"], p["c4_b"],
                           stride=2, pad=1)
    out = conv2d_1ch(out, p["out_w"], p["out_b"], pad=1)       # VPU kernel, off the MXU
    return jnp.transpose(out, (1, 0, 2, 3))                    # back to NCHW


if __name__ == "__main__":
    n_steps, time_emb_dim = 1000, 100
    key = jax.random.PRNGKey(0)
    k_params, kx, kt = jax.random.split(key, 3)
    params = init_params(k_params, n_steps, time_emb_dim)

    # Small shapes consistent with the module: batch=2, 1 input channel, 16x16 spatial
    # (16 -> 8 -> 4 -> 9 -> 16 -> 16 through the conv / transposed-conv stack).
    x = jax.random.normal(kx, (2, 1, 16, 16), jnp.float32)
    t = jax.random.randint(kt, (2,), 0, n_steps)

    fwd = jax.jit(convnet_forward)
    out = jax.block_until_ready(fwd(params, x, t))
    assert out.shape == (2, 1, 16, 16), out.shape
    assert out.dtype == jnp.float32
    print("KERNEL_OK")
</pallas_src>

<mosaic_0001>
module attributes {stable_mosaic.version = 11 : i64} {
  func.func @_matmul_bias_act_kernel(%arg0: i32, %arg1: memref<9x128xbf16, #tpu.memory_space<vmem>>, %arg2: memref<32x9xbf16, #tpu.memory_space<vmem>>, %arg3: memref<32x1xf32, #tpu.memory_space<vmem>>, %arg4: memref<32x128xf32, #tpu.memory_space<vmem>>) attributes {dimension_semantics = [#tpu.dimension_semantics<parallel>], iteration_bounds = array<i64: 1>, scalar_prefetch = 0 : i64, scratch_operands = 0 : i64, tpu.core_type = #tpu.core_type<tc>, window_params = [{transform_indices = @transform_0, window_bounds = array<i64: 9, 128>}, {pipeline_mode = #tpu.pipeline_mode<synchronous>, transform_indices = @transform_1, window_bounds = array<i64: 32, 9>}, {pipeline_mode = #tpu.pipeline_mode<synchronous>, transform_indices = @transform_2, window_bounds = array<i64: 32, 1>}, {transform_indices = @transform_3, window_bounds = array<i64: 32, 128>}]} {
    %c0 = arith.constant 0 : index
    %c0_0 = arith.constant 0 : index
    %0 = vector.load %arg2[%c0, %c0_0] : memref<32x9xbf16, #tpu.memory_space<vmem>>, vector<32x9xbf16>
    %c0_1 = arith.constant 0 : index
    %c0_2 = arith.constant 0 : index
    %1 = vector.load %arg1[%c0_1, %c0_2] : memref<9x128xbf16, #tpu.memory_space<vmem>>, vector<9x128xbf16>
    %cst = arith.constant dense<0.000000e+00> : vector<32x128xf32>
    %2 = tpu.matmul %0, %1, %cst {dimension_numbers = #tpu.dot_dimension_numbers<[1], [0], [0], [1], [0, 0, 1, 1], [], []>} : vector<32x9xbf16>, vector<9x128xbf16>, vector<32x128xf32> -> vector<32x128xf32>
    %c0_3 = arith.constant 0 : index
    %c0_4 = arith.constant 0 : index
    %3 = vector.load %arg3[%c0_3, %c0_4] : memref<32x1xf32, #tpu.memory_space<vmem>>, vector<32x1xf32>
    %4 = vector.broadcast %3 : vector<32x1xf32> to vector<32x128xf32>
    %5 = arith.addf %2, %4 : vector<32x128xf32>
    %cst_5 = arith.constant 0.000000e+00 : f32
    %6 = vector.broadcast %cst_5 : f32 to vector<32x128xf32>
    %7 = arith.maximumf %5, %6 : vector<32x128xf32>
    %c0_6 = arith.constant 0 : index
    %c0_7 = arith.constant 0 : index
    %8 = vector.load %arg4[%c0_6, %c0_7] : memref<32x128xf32, #tpu.memory_space<vmem>>, vector<32x128xf32>
    tpu.vector_store %arg4[%c0_6, %c0_7], %7 {strides = array<i32>} : memref<32x128xf32, #tpu.memory_space<vmem>>, vector<32x128xf32>,
    return
  }
  func.func @transform_0(%arg0: i32) -> (i32, i32) {
    %c0_i32 = arith.constant 0 : i32
    %c0_i32_0 = arith.constant 0 : i32
    return %c0_i32, %arg0 : i32, i32
  }
  func.func @transform_1(%arg0: i32) -> (i32, i32) {
    %c0_i32 = arith.constant 0 : i32
    %c0_i32_0 = arith.constant 0 : i32
    %c0_i32_1 = arith.constant 0 : i32
    return %c0_i32, %c0_i32_0 : i32, i32
  }
  func.func @transform_2(%arg0: i32) -> (i32, i32) {
    %c0_i32 = arith.constant 0 : i32
    %c0_i32_0 = arith.constant 0 : i32
    %c0_i32_1 = arith.constant 0 : i32
    return %c0_i32, %c0_i32_0 : i32, i32
  }
  func.func @transform_3(%arg0: i32) -> (i32, i32) {
    %c0_i32 = arith.constant 0 : i32
    %c0_i32_0 = arith.constant 0 : i32
    return %c0_i32, %arg0 : i32, i32
  }
}

module attributes {stable_mosaic.version = 11 : i64} {
  func.func @_matmul_bias_act_kernel(%arg0: i32, %arg1: memref<288x128xbf16, #tpu.memory_space<vmem>>, %arg2: memref<64x288xbf16, #tpu.memory_space<vmem>>, %arg3: memref<64x1xf32, #tpu.memory_space<vmem>>, %arg4: memref<64x128xf32, #tpu.memory_space<vmem>>) attributes {dimension_semantics = [#tpu.dimension_semantics<parallel>], iteration_bounds = array<i64: 1>, scalar_prefetch = 0 : i64, scratch_operands = 0 : i64, tpu.core_type = #tpu.core_type<tc>, window_params = [{transform_indices = @transform_0, window_bounds = array<i64: 288, 128>}, {pipeline_mode = #tpu.pipeline_mode<synchronous>, transform_indices = @transform_1, window_bounds = array<i64: 64, 288>}, {pipeline_mode = #tpu.pipeline_mode<synchronous>, transform_indices = @transform_2, window_bounds = array<i64: 64, 1>}, {transform_indices = @transform_3, window_bounds = array<i64: 64, 128>}]} {
    %c0 = arith.constant 0 : index
    %c0_0 = arith.constant 0 : index
    %0 = vector.load %arg2[%c0, %c0_0] : memref<64x288xbf16, #tpu.memory_space<vmem>>, vector<64x288xbf16>
    %c0_1 = arith.constant 0 : index
    %c0_2 = arith.constant 0 : index
    %1 = vector.load %arg1[%c0_1, %c0_2] : memref<288x128xbf16, #tpu.memory_space<vmem>>, vector<288x128xbf16>
    %cst = arith.constant dense<0.000000e+00> : vector<64x128xf32>
    %2 = tpu.matmul %0, %1, %cst {dimension_numbers = #tpu.dot_dimension_numbers<[1], [0], [0], [1], [0, 0, 1, 1], [], []>} : vector<64x288xbf16>, vector<288x128xbf16>, vector<64x128xf32> -> vector<64x128xf32>
    %c0_3 = arith.constant 0 : index
    %c0_4 = arith.constant 0 : index
    %3 = vector.load %arg3[%c0_3, %c0_4] : memref<64x1xf32, #tpu.memory_space<vmem>>, vector<64x1xf32>
    %4 = vector.broadcast %3 : vector<64x1xf32> to vector<64x128xf32>
    %5 = arith.addf %2, %4 : vector<64x128xf32>
    %cst_5 = arith.constant 0.000000e+00 : f32
    %6 = vector.broadcast %cst_5 : f32 to vector<64x128xf32>
    %7 = arith.maximumf %5, %6 : vector<64x128xf32>
    %c0_6 = arith.constant 0 : index
    %c0_7 = arith.constant 0 : index
    %8 = vector.load %arg4[%c0_6, %c0_7] : memref<64x128xf32, #tpu.memory_space<vmem>>, vector<64x128xf32>
    tpu.vector_store %arg4[%c0_6, %c0_7], %7 {strides = array<i32>} : memref<64x128xf32, #tpu.memory_space<vmem>>, vector<64x128xf32>,
    return
  }
  func.func @transform_0(%arg0: i32) -> (i32, i32) {
    %c0_i32 = arith.constant 0 : i32
    %c0_i32_0 = arith.constant 0 : i32
    return %c0_i32, %arg0 : i32, i32
  }
  func.func @transform_1(%arg0: i32) -> (i32, i32) {
    %c0_i32 = arith.constant 0 : i32
    %c0_i32_0 = arith.constant 0 : i32
    %c0_i32_1 = arith.constant 0 : i32
    return %c0_i32, %c0_i32_0 : i32, i32
  }
  func.func @transform_2(%arg0: i32) -> (i32, i32) {
    %c0_i32 = arith.constant 0 : i32
    %c0_i32_0 = arith.constant 0 : i32
    %c0_i32_1 = arith.constant 0 : i32
    return %c0_i32, %c0_i32_0 : i32, i32
  }
  func.func @transform_3(%arg0: i32) -> (i32, i32) {
    %c0_i32 = arith.constant 0 : i32
    %c0_i32_0 = arith.constant 0 : i32
    return %c0_i32, %arg0 : i32, i32
  }
}

module attributes {stable_mosaic.version = 11 : i64} {
  func.func @_matmul_bias_act_kernel(%arg0: i32, %arg1: memref<576x128xbf16, #tpu.memory_space<vmem>>, %arg2: memref<128x576xbf16, #tpu.memory_space<vmem>>, %arg3: memref<128x1xf32, #tpu.memory_space<vmem>>, %arg4: memref<128x128xf32, #tpu.memory_space<vmem>>) attributes {dimension_semantics = [#tpu.dimension_semantics<parallel>], iteration_bounds = array<i64: 1>, scalar_prefetch = 0 : i64, scratch_operands = 0 : i64, tpu.core_type = #tpu.core_type<tc>, window_params = [{transform_indices = @transform_0, window_bounds = array<i64: 576, 128>}, {pipeline_mode = #tpu.pipeline_mode<synchronous>, transform_indices = @transform_1, window_bounds = array<i64: 128, 576>}, {pipeline_mode = #tpu.pipeline_mode<synchronous>, transform_indices = @transform_2, window_bounds = array<i64: 128, 1>}, {transform_indices = @transform_3, window_bounds = array<i64: 128, 128>}]} {
    %c0 = arith.constant 0 : index
    %c0_0 = arith.constant 0 : index
    %0 = vector.load %arg2[%c0, %c0_0] : memref<128x576xbf16, #tpu.memory_space<vmem>>, vector<128x576xbf16>
    %c0_1 = arith.constant 0 : index
    %c0_2 = arith.constant 0 : index
    %1 = vector.load %arg1[%c0_1, %c0_2] : memref<576x128xbf16, #tpu.memory_space<vmem>>, vector<576x128xbf16>
    %cst = arith.constant dense<0.000000e+00> : vector<128x128xf32>
    %2 = tpu.matmul %0, %1, %cst {dimension_numbers = #tpu.dot_dimension_numbers<[1], [0], [0], [1], [0, 0, 1, 1], [], []>} : vector<128x576xbf16>, vector<576x128xbf16>, vector<128x128xf32> -> vector<128x128xf32>
    %c0_3 = arith.constant 0 : index
    %c0_4 = arith.constant 0 : index
    %3 = vector.load %arg3[%c0_3, %c0_4] : memref<128x1xf32, #tpu.memory_space<vmem>>, vector<128x1xf32>
    %4 = vector.broadcast %3 : vector<128x1xf32> to vector<128x128xf32>
    %5 = arith.addf %2, %4 : vector<128x128xf32>
    %c0_5 = arith.constant 0 : index
    %c0_6 = arith.constant 0 : index
    %6 = vector.load %arg4[%c0_5, %c0_6] : memref<128x128xf32, #tpu.memory_space<vmem>>, vector<128x128xf32>
    tpu.vector_store %arg4[%c0_5, %c0_6], %5 {strides = array<i32>} : memref<128x128xf32, #tpu.memory_space<vmem>>, vector<128x128xf32>,
    return
  }
  func.func @transform_0(%arg0: i32) -> (i32, i32) {
    %c0_i32 = arith.constant 0 : i32
    %c0_i32_0 = arith.constant 0 : i32
    return %c0_i32, %arg0 : i32, i32
  }
  func.func @transform_1(%arg0: i32) -> (i32, i32) {
    %c0_i32 = arith.constant 0 : i32
    %c0_i32_0 = arith.constant 0 : i32
    %c0_i32_1 = arith.constant 0 : i32
    return %c0_i32, %c0_i32_0 : i32, i32
  }
  func.func @transform_2(%arg0: i32) -> (i32, i32) {
    %c0_i32 = arith.constant 0 : i32
    %c0_i32_0 = arith.constant 0 : i32
    %c0_i32_1 = arith.constant 0 : i32
    return %c0_i32, %c0_i32_0 : i32, i32
  }
  func.func @transform_3(%arg0: i32) -> (i32, i32) {
    %c0_i32 = arith.constant 0 : i32
    %c0_i32_0 = arith.constant 0 : i32
    return %c0_i32, %arg0 : i32, i32
  }
}

module attributes {stable_mosaic.version = 11 : i64} {
  func.func @_matmul_bias_act_kernel(%arg0: i32, %arg1: memref<128x128xbf16, #tpu.memory_space<vmem>>, %arg2: memref<4x128xbf16, #tpu.memory_space<vmem>>, %arg3: memref<4x1xf32, #tpu.memory_space<vmem>>, %arg4: memref<4x128xf32, #tpu.memory_space<vmem>>) attributes {dimension_semantics = [#tpu.dimension_semantics<parallel>], iteration_bounds = array<i64: 1>, scalar_prefetch = 0 : i64, scratch_operands = 0 : i64, tpu.core_type = #tpu.core_type<tc>, window_params = [{transform_indices = @transform_0, window_bounds = array<i64: 128, 128>}, {pipeline_mode = #tpu.pipeline_mode<synchronous>, transform_indices = @transform_1, window_bounds = array<i64: 4, 128>}, {pipeline_mode = #tpu.pipeline_mode<synchronous>, transform_indices = @transform_2, window_bounds = array<i64: 4, 1>}, {transform_indices = @transform_3, window_bounds = array<i64: 4, 128>}]} {
    %c0 = arith.constant 0 : index
    %c0_0 = arith.constant 0 : index
    %0 = vector.load %arg2[%c0, %c0_0] : memref<4x128xbf16, #tpu.memory_space<vmem>>, vector<4x128xbf16>
    %c0_1 = arith.constant 0 : index
    %c0_2 = arith.constant 0 : index
    %1 = vector.load %arg1[%c0_1, %c0_2] : memref<128x128xbf16, #tpu.memory_space<vmem>>, vector<128x128xbf16>
    %cst = arith.constant dense<0.000000e+00> : vector<4x128xf32>
    %2 = tpu.matmul %0, %1, %cst {dimension_numbers = #tpu.dot_dimension_numbers<[1], [0], [0], [1], [0, 0, 1, 1], [], []>} : vector<4x128xbf16>, vector<128x128xbf16>, vector<4x128xf32> -> vector<4x128xf32>
    %c0_3 = arith.constant 0 : index
    %c0_4 = arith.constant 0 : index
    %3 = vector.load %arg3[%c0_3, %c0_4] : memref<4x1xf32, #tpu.memory_space<vmem>>, vector<4x1xf32>
    %4 = vector.broadcast %3 : vector<4x1xf32> to vector<4x128xf32>
    %5 = arith.addf %2, %4 : vector<4x128xf32>
    %c0_5 = arith.constant 0 : index
    %c0_6 = arith.constant 0 : index
    %6 = vector.load %arg4[%c0_5, %c0_6] : memref<4x128xf32, #tpu.memory_space<vmem>>, vector<4x128xf32>
    tpu.vector_store %arg4[%c0_5, %c0_6], %5 {strides = array<i32>} : memref<4x128xf32, #tpu.memory_space<vmem>>, vector<4x128xf32>,
    return
  }
  func.func @transform_0(%arg0: i32) -> (i32, i32) {
    %c0_i32 = arith.constant 0 : i32
    %c0_i32_0 = arith.constant 0 : i32
    return %c0_i32, %arg0 : i32, i32
  }
  func.func @transform_1(%arg0: i32) -> (i32, i32) {
    %c0_i32 = arith.constant 0 : i32
    %c0_i32_0 = arith.constant 0 : i32
    %c0_i32_1 = arith.constant 0 : i32
    return %c0_i32, %c0_i32_0 : i32, i32
  }
  func.func @transform_2(%arg0: i32) -> (i32, i32) {
    %c0_i32 = arith.constant 0 : i32
    %c0_i32_0 = arith.constant 0 : i32
    %c0_i32_1 = arith.constant 0 : i32
    return %c0_i32, %c0_i32_0 : i32, i32
  }
  func.func @transform_3(%arg0: i32) -> (i32, i32) {
    %c0_i32 = arith.constant 0 : i32
    %c0_i32_0 = arith.constant 0 : i32
    return %c0_i32, %arg0 : i32, i32
  }
}

module attributes {stable_mosaic.version = 11 : i64} {
  func.func @_conv_1ch_kernel(%arg0: memref<2x18x18xf32, #tpu.memory_space<vmem>>, %arg1: memref<9xf32, #tpu.memory_space<smem>>, %arg2: memref<1xf32, #tpu.memory_space<smem>>, %arg3: memref<2x16x16xf32, #tpu.memory_space<vmem>>) attributes {dimension_semantics = [], scalar_prefetch = 0 : i64, scratch_operands = 0 : i64, tpu.core_type = #tpu.core_type<tc>} {
    %c0 = arith.constant 0 : index
    %c0_0 = arith.constant 0 : index
    %c0_1 = arith.constant 0 : index
    %0 = vector.load %arg0[%c0, %c0_0, %c0_1] : memref<2x18x18xf32, #tpu.memory_space<vmem>>, vector<2x18x18xf32>
    %cst = arith.constant 0.000000e+00 : f32
    %1 = vector.broadcast %cst : f32 to vector<2x16x16xf32>
    %c0_2 = arith.constant 0 : index
    %2 = memref.load %arg2[%c0_2] : memref<1xf32, #tpu.memory_space<smem>>
    %3 = vector.broadcast %2 : f32 to vector<2x16x16xf32>
    %4 = arith.addf %1, %3 : vector<2x16x16xf32>
    %c0_3 = arith.constant 0 : index
    %5 = memref.load %arg1[%c0_3] : memref<9xf32, #tpu.memory_space<smem>>
    %6 = vector.extract_strided_slice %0 {offsets = [0, 0, 0], sizes = [2, 16, 16], strides = [1, 1, 1]} : vector<2x18x18xf32> to vector<2x16x16xf32>
    %7 = vector.broadcast %5 : f32 to vector<2x16x16xf32>
    %8 = arith.mulf %7, %6 : vector<2x16x16xf32>
    %9 = arith.addf %4, %8 : vector<2x16x16xf32>
    %c1 = arith.constant 1 : index
    %10 = memref.load %arg1[%c1] : memref<9xf32, #tpu.memory_space<smem>>
    %11 = vector.extract_strided_slice %0 {offsets = [0, 0, 1], sizes = [2, 16, 16], strides = [1, 1, 1]} : vector<2x18x18xf32> to vector<2x16x16xf32>
    %12 = vector.broadcast %10 : f32 to vector<2x16x16xf32>
    %13 = arith.mulf %12, %11 : vector<2x16x16xf32>
    %14 = arith.addf %9, %13 : vector<2x16x16xf32>
    %c2 = arith.constant 2 : index
    %15 = memref.load %arg1[%c2] : memref<9xf32, #tpu.memory_space<smem>>
    %16 = vector.extract_strided_slice %0 {offsets = [0, 0, 2], sizes = [2, 16, 16], strides = [1, 1, 1]} : vector<2x18x18xf32> to vector<2x16x16xf32>
    %17 = vector.broadcast %15 : f32 to vector<2x16x16xf32>
    %18 = arith.mulf %17, %16 : vector<2x16x16xf32>
    %19 = arith.addf %14, %18 : vector<2x16x16xf32>
    %c3 = arith.constant 3 : index
    %20 = memref.load %arg1[%c3] : memref<9xf32, #tpu.memory_space<smem>>
    %21 = vector.extract_strided_slice %0 {offsets = [0, 1, 0], sizes = [2, 16, 16], strides = [1, 1, 1]} : vector<2x18x18xf32> to vector<2x16x16xf32>
    %22 = vector.broadcast %20 : f32 to vector<2x16x16xf32>
    %23 = arith.mulf %22, %21 : vector<2x16x16xf32>
    %24 = arith.addf %19, %23 : vector<2x16x16xf32>
    %c4 = arith.constant 4 : index
    %25 = memref.load %arg1[%c4] : memref<9xf32, #tpu.memory_space<smem>>
    %26 = vector.extract_strided_slice %0 {offsets = [0, 1, 1], sizes = [2, 16, 16], strides = [1, 1, 1]} : vector<2x18x18xf32> to vector<2x16x16xf32>
    %27 = vector.broadcast %25 : f32 to vector<2x16x16xf32>
    %28 = arith.mulf %27, %26 : vector<2x16x16xf32>
    %29 = arith.addf %24, %28 : vector<2x16x16xf32>
    %c5 = arith.constant 5 : index
    %30 = memref.load %arg1[%c5] : memref<9xf32, #tpu.memory_space<smem>>
    %31 = vector.extract_strided_slice %0 {offsets = [0, 1, 2], sizes = [2, 16, 16], strides = [1, 1, 1]} : vector<2x18x18xf32> to vector<2x16x16xf32>
    %32 = vector.broadcast %30 : f32 to vector<2x16x16xf32>
    %33 = arith.mulf %32, %31 : vector<2x16x16xf32>
    %34 = arith.addf %29, %33 : vector<2x16x16xf32>
    %c6 = arith.constant 6 : index
    %35 = memref.load %arg1[%c6] : memref<9xf32, #tpu.memory_space<smem>>
    %36 = vector.extract_strided_slice %0 {offsets = [0, 2, 0], sizes = [2, 16, 16], strides = [1, 1, 1]} : vector<2x18x18xf32> to vector<2x16x16xf32>
    %37 = vector.broadcast %35 : f32 to vector<2x16x16xf32>
    %38 = arith.mulf %37, %36 : vector<2x16x16xf32>
    %39 = arith.addf %34, %38 : vector<2x16x16xf32>
    %c7 = arith.constant 7 : index
    %40 = memref.load %arg1[%c7] : memref<9xf32, #tpu.memory_space<smem>>
    %41 = vector.extract_strided_slice %0 {offsets = [0, 2, 1], sizes = [2, 16, 16], strides = [1, 1, 1]} : vector<2x18x18xf32> to vector<2x16x16xf32>
    %42 = vector.broadcast %40 : f32 to vector<2x16x16xf32>
    %43 = arith.mulf %42, %41 : vector<2x16x16xf32>
    %44 = arith.addf %39, %43 : vector<2x16x16xf32>
    %c8 = arith.constant 8 : index
    %45 = memref.load %arg1[%c8] : memref<9xf32, #tpu.memory_space<smem>>
    %46 = vector.extract_strided_slice %0 {offsets = [0, 2, 2], sizes = [2, 16, 16], strides = [1, 1, 1]} : vector<2x18x18xf32> to vector<2x16x16xf32>
    %47 = vector.broadcast %45 : f32 to vector<2x16x16xf32>
    %48 = arith.mulf %47, %46 : vector<2x16x16xf32>
    %49 = arith.addf %44, %48 : vector<2x16x16xf32>
    %c0_4 = arith.constant 0 : index
    %c0_5 = arith.constant 0 : index
    %c0_6 = arith.constant 0 : index
    %50 = vector.load %arg3[%c0_4, %c0_5, %c0_6] : memref<2x16x16xf32, #tpu.memory_space<vmem>>, vector<2x16x16xf32>
    tpu.vector_store %arg3[%c0_4, %c0_5, %c0_6], %49 {strides = array<i32>} : memref<2x16x16xf32, #tpu.memory_space<vmem>>, vector<2x16x16xf32>,
    return
  }
}

</mosaic_0001>

<bundles_post_ra>
// kernel: convnet_forward.5
= control target key start
LH: loop header
LB: loop body
LE: loop exit
PB: predicated region body
PF: predicated region fallthrough
CT: control target
= control target key end

     0   :  { %vm67_vm0 = vcmask 1043456   ;;  %vm68_vm1 = vcmask 1044480   ;;  %vm60_vm2 = vcmask 72704   ;;  %v156_v1 = vmov 65535   ;;  %s213_s0 = inlined_call_operand.vmem [shape: bf16[9,128], index: 0, kind: input, shape index: {}]   ;;  %s214_s1 = inlined_call_operand.vmem [shape: bf16[32,9], index: 1, kind: input, shape index: {}]   ;;  %s215_s2 = inlined_call_operand.vmem [shape: f32[32,1], index: 2, kind: input, shape index: {}]   ;;  %s216_s3 = inlined_call_operand.vmem [shape: f32[32,128], index: 3, kind: output, shape index: {}]  }
   0x1   :  { %v153_v0 = vld [vmem:[%s213_s0] sm:$0x1f]   ;;  %v69_v2 = vsel %vm67_vm0, 4294967295, %v156_v1  ;;  %v23_v6 = vld [vmem:[%s215_s2 + $0x10] sm:$0xff]  ;;  %v157_v8 = vmov 0   ;;  %v155_v9 = vld [vmem:[%s214_s1 + $0x8] sm:$0xff]  }
   0x2   :  { %v154_v3 = vld [vmem:[%s214_s1] sm:$0xff]   ;;  %v70_v4 = vsel %vm68_vm1, %v69_v2, 0  ;;  %152 = vset.pattern.permute.xlu1 %v157_v8  ;;  %151 = vset.pattern.permute.xlu0 %v157_v8  ;;  %v24_v10 = vld [vmem:[%s215_s2 + $0x18] sm:$0xff]  ;;  %v22_v11 = vld [vmem:[%s215_s2 + $0x8] sm:$0xff] }
   0x3   :  { %v72_v5 = vand.u32 %v153_v0, %v70_v4  ;;  %145 = vmatprep.mubr.msk.bf16.mxu0 %vm60_vm2, %v154_v3  ;;  %v21_v7 = vld [vmem:[%s215_s2] sm:$0xff]  ;;  %37 = vperm.xlu1 %152, %v23_v6  }
   0x4   :  { %27 = vperm.xlu0 %151, %v21_v7  }
   0x5   :  { %143 = vmatprep.subr.bf16.mxu0 %v72_v5 }
   0x6   :  { %144 = vmatpush3.bf16.msra.mxu0 %v72_v5 }
   0x7   :  { %42 = vperm.xlu1 %152, %v24_v10  }
   0x8   :  { %32 = vperm.xlu0 %151, %v22_v11  }
   0x9   :  { %146 = vmatmul.mubr.msk.bf16.vlgmr.msra.gmra.mrb[0].mxu0 %vm60_vm2, %v155_v9 }
  0x82   :  { %v38_v12 = vpop.permute.xlu1 %37 }
  0x83   :  { %v28_v13 = vpop.permute.xlu0 %27 }
  0x86   :  { %v43_v17 = vpop.permute.xlu1 %42 }
  0x87   :  { %v33_v20 = vpop.permute.xlu0 %32 }
  0xdc   :  { %v147_v14 = vpop.f32.mrb[0].mxu0 }
  0xdd   :  { %v117_v15 = vadd.f32 %v147_v14, %v38_v12  ;;  %v108_v16 = vpop.f32.mrb[1].mxu0 }
  0xde   :  { %v109_v18 = vadd.f32 %v108_v16, %v28_v13  ;;  %v148_v19 = vpop.f32.mrb[2].mxu0 }
  0xdf   :  { %v125_v21 = vmax.f32 %v117_v15, 0.0  ;;  %v120_v22 = vadd.f32 %v148_v19, %v43_v17  ;;  %v111_v23 = vpop.f32.mrb[3].mxu0 }
  0xe0   :  { %v123_v24 = vmax.f32 %v109_v18, 0.0  ;;  %v112_v25 = vadd.f32 %v111_v23, %v33_v20 }
  0xe1   :  { %129 = vst [vmem:[%s216_s3 + $0x10] sm:$0xff] %v125_v21  ;;  %v126_v26 = vmax.f32 %v120_v22, 0.0 }
  0xe2   :  { %127 = vst [vmem:[%s216_s3] sm:$0xff] %v123_v24  ;;  %v124_v27 = vmax.f32 %v112_v25, 0.0 }
  0xe3   :  { %130 = vst [vmem:[%s216_s3 + $0x18] sm:$0xff] %v126_v26 }
  0xe4   :  { %128 = vst [vmem:[%s216_s3 + $0x8] sm:$0xff] %v124_v27 }

// kernel: convnet_forward.6
= control target key start
LH: loop header
LB: loop body
LE: loop exit
PB: predicated region body
PF: predicated region fallthrough
CT: control target
= control target key end

     0   :  { %v591_v1 = vmov 0   ;;  %vm283_vm0 = vcmask 261120   ;;  %s754_s0 = inlined_call_operand.vmem [shape: bf16[288,128], index: 0, kind: input, shape index: {}]   ;;  %s755_s1 = inlined_call_operand.vmem [shape: bf16[64,288], index: 1, kind: input, shape index: {}]   ;;  %s756_s2 = inlined_call_operand.vmem [shape: f32[64,1], index: 2, kind: input, shape index: {}]   ;;  %s757_s3 = inlined_call_operand.vmem [shape: f32[64,128], index: 3, kind: output, shape index: {}]  }
   0x1   :  { %v557_v0 = vld [vmem:[%s754_s0 + $0x40] sm:$0xff]   ;;  %556 = vset.pattern.permute.xlu1 %v591_v1  ;;  %555 = vset.pattern.permute.xlu0 %v591_v1  ;;  %v559_v3 = vld [vmem:[%s754_s0 + $0x48] sm:$0xff]   ;;  %v561_v5 = vld [vmem:[%s754_s0 + $0x50] sm:$0xff]  }
   0x2   :  { %v558_v2 = vld [vmem:[%s754_s0] sm:$0xff]   ;;  %480 = vmatprep.subr.bf16.mxu0 %v557_v0  ;;  %538 = vmatprep.subr.bf16.mxu1 %v557_v0  ;;  %v560_v4 = vld [vmem:[%s754_s0 + $0x8] sm:$0xff]   ;;  %v562_v6 = vld [vmem:[%s754_s0 + $0x10] sm:$0xff]  }
   0x3   :  { %481 = vmatpush3.bf16.msra.mxu0 %v558_v2  ;;  %546 = vmatpush3.bf16.msra.mxu1 %v558_v2  ;;  %v563_v7 = vld [vmem:[%s754_s0 + $0x58] sm:$0xff]   ;;  %v565_v9 = vld [vmem:[%s754_s0 + $0x60] sm:$0xff]   ;;  %v567_v11 = vld [vmem:[%s754_s0 + $0x68] sm:$0xff]  }
   0x4   :  { %482 = vmatprep.subr.bf16.mxu0 %v559_v3  ;;  %539 = vmatprep.subr.bf16.mxu1 %v559_v3  ;;  %v564_v8 = vld [vmem:[%s754_s0 + $0x18] sm:$0xff]   ;;  %v566_v10 = vld [vmem:[%s754_s0 + $0x20] sm:$0xff]   ;;  %v568_v14 = vld [vmem:[%s754_s0 + $0x28] sm:$0xff]  }
   0x5   :  { %v575_v12 = vld [vmem:[%s755_s1 + $0x4] ss:$12 sps:$4 sm:$0xff]   ;;  %v578_v13 = vld [vmem:[%s755_s1 + $0x4c] ss:$12 sps:$4 sm:$0xff]   ;;  %v576_v23 = vld [vmem:[%s755_s1 + $0x48] ss:$12 sps:$4 sm:$0xff]  }
   0x6   :  { %v569_v15 = vld [vmem:[%s754_s0 + $0x70] sm:$0xff]   ;;  %328 = vmatprep.mubr.bf16.mxu0 %v575_v12  ;;  %352 = vmatprep.mubr.bf16.mxu1 %v578_v13  ;;  %v571_v17 = vld [vmem:[%s754_s0 + $0x78] sm:$0xff]   ;;  %v67_v20 = vld [vmem:[%s756_s2] sm:$0xff] }
   0x7   :  { %483 = vmatpush3.bf16.msra.mxu0 %v560_v4  ;;  %547 = vmatpush3.bf16.msra.mxu1 %v560_v4  ;;  %v570_v16 = vld [vmem:[%s754_s0 + $0x30] sm:$0xff]   ;;  %v572_v18 = vld [vmem:[%s754_s0 + $0x38] sm:$0xff]   ;;  %v579_v21 = vld [vmem:[%s754_s0 + $0x80] sm:$0xff]  }
   0x8   :  { %484 = vmatprep.subr.bf16.mxu0 %v561_v5  ;;  %540 = vmatprep.subr.bf16.mxu1 %v561_v5  ;;  %v69_v19 = vld [vmem:[%s756_s2 + $0x10] sm:$0xff]  ;;  %v573_v22 = vld [vmem:[%s755_s1] ss:$12 sps:$4 sm:$0xff]   ;;  %v70_v24 = vld [vmem:[%s756_s2 + $0x18] sm:$0xff] }
   0x9   :  { %87 = vperm.xlu1 %556, %v69_v19   ;;  %77 = vperm.xlu0 %555, %v67_v20   ;;  %v68_v25 = vld [vmem:[%s756_s2 + $0x8] sm:$0xff]  ;;  %v71_v30 = vld [vmem:[%s756_s2 + $0x20] sm:$0xff]  ;;  %v74_v33 = vld [vmem:[%s756_s2 + $0x38] sm:$0xff] }
   0xa   :  { %v581_v26 = vld [vmem:[%s755_s1 + $0x1c] ss:$12 sps:$4 sm:$0xff]   ;;  %v584_v31 = vld [vmem:[%s755_s1 + $0x18] ss:$12 sps:$4 sm:$0xff]   ;;  %v585_v32 = vld [vmem:[%s755_s1 + $0x20] ss:$12 sps:$4 sm:$0xff]  }
   0xb   :  { %485 = vmatpush3.bf16.msra.mxu0 %v562_v6  ;;  %548 = vmatpush3.bf16.msra.mxu1 %v562_v6  ;;  %v580_v27 = vld [vmem:[%s754_s0 + $0x88] sm:$0xff]   ;;  %v73_v34 = vld [vmem:[%s756_s2 + $0x30] sm:$0xff]  ;;  %v588_v36 = vld [vmem:[%s755_s1 + $0x38] ss:$12 sps:$4 sm:$0xff]  }
   0xc   :  { %486 = vmatprep.subr.bf16.mxu0 %v563_v7  ;;  %541 = vmatprep.subr.bf16.mxu1 %v563_v7  ;;  %v583_v28 = vld [vmem:[%s755_s1 + $0x8] ss:$12 sps:$4 sm:$0xff]   ;;  %v589_v37 = vld [vmem:[%s755_s1 + $0x30] ss:$12 sps:$4 sm:$0xff]  }
   0xd   :  { %92 = vperm.xlu1 %556, %v70_v24   ;;  %82 = vperm.xlu0 %555, %v68_v25   ;;  %v72_v29 = vld [vmem:[%s756_s2 + $0x28] sm:$0xff]  ;;  %v586_v35 = vld [vmem:[%s755_s1 + $0x34] ss:$12 sps:$4 sm:$0xff]   ;;  %v590_v38 = vld [vmem:[%s755_s1 + $0x50] ss:$12 sps:$4 sm:$0xff]  }
   0xf   :  { %487 = vmatpush3.bf16.msra.mxu0 %v564_v8  ;;  %549 = vmatpush3.bf16.msra.mxu1 %v564_v8 }
  0x10   :  { %488 = vmatprep.subr.bf16.mxu0 %v565_v9  ;;  %542 = vmatprep.subr.bf16.mxu1 %v565_v9 }
  0x11   :  { %102 = vperm.xlu1 %556, %v72_v29   ;;  %97 = vperm.xlu0 %555, %v71_v30  }
  0x13   :  { %489 = vmatpush3.bf16.msra.mxu0 %v566_v10  ;;  %550 = vmatpush3.bf16.msra.mxu1 %v566_v10 }
  0x14   :  { %490 = vmatprep.subr.bf16.mxu0 %v567_v11  ;;  %543 = vmatprep.subr.bf16.mxu1 %v567_v11 }
  0x15   :  { %112 = vperm.xlu1 %556, %v74_v33   ;;  %107 = vperm.xlu0 %555, %v73_v34  }
  0x17   :  { %491 = vmatpush3.bf16.msra.mxu0 %v568_v14  ;;  %551 = vmatpush3.bf16.msra.mxu1 %v568_v14 }
  0x18   :  { %492 = vmatprep.subr.bf16.mxu0 %v569_v15  ;;  %544 = vmatprep.subr.bf16.mxu1 %v569_v15 }
  0x1b   :  { %493 = vmatpush3.bf16.msra.mxu0 %v570_v16  ;;  %552 = vmatpush3.bf16.msra.mxu1 %v570_v16 }
  0x1c   :  { %494 = vmatprep.subr.bf16.mxu0 %v571_v17  ;;  %545 = vmatprep.subr.bf16.mxu1 %v571_v17 }
  0x1f   :  { %495 = vmatpush3.bf16.msra.mxu0 %v572_v18  ;;  %553 = vmatpush3.bf16.msra.mxu1 %v572_v18 }
  0x20   :  { %526 = vmatprep.subr.bf16.mxu1 %v579_v21 }
  0x22   :  { %329 = vmatmul.mubr.bf16.vlgmr.msra.gmra.mrb[0].mxu0 %v573_v22  ;;  %353 = vmatmul.mubr.bf16.vlgmr.msra.gmra.mrb[0].mxu1 %v576_v23 }
  0x23   :  { %527 = vmatpush3.bf16.msra.mxu1 %v579_v21  ;;  %336 = vmatprep.mubr.bf16.mxu0 %v581_v26 }
  0x24   :  { %528 = vmatprep.subr.bf16.mxu1 %v580_v27  ;;  %530 = vmatprep.mubr.msk.bf16.mxu1 %vm283_vm0, %v583_v28 }
  0x27   :  { %529 = vmatpush3.bf16.msra.mxu1 %v580_v27 }
  0x2a   :  { %337 = vmatmul.mubr.bf16.gmra.mrb[4].mxu0 %v584_v31  ;;  %531 = vmatmul.mubr.msk.bf16.vlgmr.msra.gmra.mrb[4].mxu1 %vm283_vm0, %v585_v32 }
  0x2b   :  { %344 = vmatprep.mubr.bf16.mxu0 %v586_v35  ;;  %534 = vmatprep.mubr.msk.bf16.mxu1 %vm283_vm0, %v588_v36 }
  0x32   :  { %345 = vmatmul.mubr.bf16.gmra.mrb[8].mxu0 %v589_v37  ;;  %535 = vmatmul.mubr.msk.bf16.gmra.mrb[8].mxu1 %vm283_vm0, %v590_v38 }
  0x88   :  { %v88_v39 = vpop.permute.xlu1 %87  ;;  %v78_v40 = vpop.permute.xlu0 %77 }
  0x8c   :  { %v93_v41 = vpop.permute.xlu1 %92  ;;  %v83_v42 = vpop.permute.xlu0 %82 }
  0x90   :  { %v98_v55 = vpop.permute.xlu0 %97  ;;  %v103_v56 = vpop.permute.xlu1 %102 }
  0x94   :  { %v108_v5 = vpop.permute.xlu0 %107  ;;  %v113_v10 = vpop.permute.xlu1 %112 }
  0xf5   :  { %v496_v43 = vpop.f32.mrb[0].mxu0  ;;  %v514_v44 = vpop.f32.mrb[0].mxu1 }
  0xf6   :  { %v497_v45 = vpop.f32.mrb[1].mxu0  ;;  %v515_v46 = vpop.f32.mrb[1].mxu1 }
  0xf7   :  { %v498_v47 = vadd.f32 %v497_v45, %v496_v43  ;;  %v499_v48 = vpop.f32.mrb[2].mxu0  ;;  %v516_v49 = vadd.f32 %v515_v46, %v514_v44  ;;  %v517_v50 = vpop.f32.mrb[2].mxu1 }
  0xf8   :  { %v500_v51 = vpop.f32.mrb[3].mxu0  ;;  %v518_v52 = vpop.f32.mrb[3].mxu1 }
  0xf9   :  { %v501_v53 = vadd.f32 %v500_v51, %v499_v48  ;;  %v519_v54 = vadd.f32 %v518_v52, %v517_v50  ;;  %v331_v59 = vadd.f32 %v498_v47, %v78_v40  ;;  %v355_v14 = vadd.f32 %v516_v49, %v108_v5 }
  0xfb   :  { %v334_v2 = vadd.f32 %v501_v53, %v83_v42  ;;  %v358_v19 = vadd.f32 %v519_v54, %v113_v10 }
  0xfd   :  { %v502_v57 = vpop.f32.mrb[4].mxu0  ;;  %v532_v58 = vpop.f32.mrb[4].mxu1 }
  0xfe   :  { %v503_v60 = vpop.f32.mrb[5].mxu0  ;;  %v395_v61 = vpop.f32.mrb[5].mxu1 }
  0xff   :  { %v504_v62 = vadd.f32 %v503_v60, %v502_v57  ;;  %v396_v63 = vadd.f32 %v395_v61, %v331_v59  ;;  %v505_v0 = vpop.f32.mrb[6].mxu0  ;;  %v533_v1 = vpop.f32.mrb[6].mxu1 }
 0x100   :  { %v506_v3 = vpop.f32.mrb[7].mxu0  ;;  %v398_v4 = vpop.f32.mrb[7].mxu1 }
 0x101   :  { %v339_v6 = vadd.f32 %v504_v62, %v88_v39  ;;  %v426_v7 = vmax.f32 %v396_v63, 0.0  ;;  %v507_v8 = vadd.f32 %v506_v3, %v505_v0  ;;  %v399_v9 = vadd.f32 %v398_v4, %v334_v2 }
 0x103   :  { %v404_v11 = vadd.f32 %v532_v58, %v339_v6  ;;  %434 = vst [vmem:[%s757_s3] sm:$0xff] %v426_v7  ;;  %v342_v12 = vadd.f32 %v507_v8, %v93_v41  ;;  %v427_v13 = vmax.f32 %v399_v9, 0.0 }
 0x105   :  { %v428_v15 = vmax.f32 %v404_v11, 0.0  ;;  %v407_v16 = vadd.f32 %v533_v1, %v342_v12  ;;  %435 = vst [vmem:[%s757_s3 + $0x8] sm:$0xff] %v427_v13  ;;  %v508_v17 = vpop.f32.mrb[8].mxu0  ;;  %v536_v18 = vpop.f32.mrb[8].mxu1 }
 0x106   :  { %v420_v20 = vadd.f32 %v536_v18, %v355_v14  ;;  %v509_v21 = vpop.f32.mrb[9].mxu0  ;;  %v411_v22 = vpop.f32.mrb[9].mxu1 }
 0x107   :  { %436 = vst [vmem:[%s757_s3 + $0x10] sm:$0xff] %v428_v15  ;;  %v429_v23 = vmax.f32 %v407_v16, 0.0  ;;  %v510_v24 = vadd.f32 %v509_v21, %v508_v17  ;;  %v511_v25 = vpop.f32.mrb[10].mxu0  ;;  %v537_v26 = vpop.f32.mrb[10].mxu1 }
 0x108   :  { %v432_v27 = vmax.f32 %v420_v20, 0.0  ;;  %v423_v28 = vadd.f32 %v537_v26, %v358_v19  ;;  %v512_v29 = vpop.f32.mrb[11].mxu0  ;;  %v414_v30 = vpop.f32.mrb[11].mxu1 }
 0x109   :  { %437 = vst [vmem:[%s757_s3 + $0x18] sm:$0xff] %v429_v23  ;;  %v347_v31 = vadd.f32 %v510_v24, %v98_v55  ;;  %v513_v32 = vadd.f32 %v512_v29, %v511_v25 }
 0x10a   :  { %440 = vst [vmem:[%s757_s3 + $0x30] sm:$0xff] %v432_v27  ;;  %v433_v33 = vmax.f32 %v423_v28, 0.0 }
 0x10b   :  { %v412_v34 = vadd.f32 %v411_v22, %v347_v31  ;;  %v350_v35 = vadd.f32 %v513_v32, %v103_v56 }
 0x10c   :  { %441 = vst [vmem:[%s757_s3 + $0x38] sm:$0xff] %v433_v33 }
 0x10d   :  { %v430_v36 = vmax.f32 %v412_v34, 0.0  ;;  %v415_v37 = vadd.f32 %v414_v30, %v350_v35 }
 0x10f   :  { %438 = vst [vmem:[%s757_s3 + $0x20] sm:$0xff] %v430_v36  ;;  %v431_v38 = vmax.f32 %v415_v37, 0.0 }
 0x111   :  { %439 = vst [vmem:[%s757_s3 + $0x28] sm:$0xff] %v431_v38 }

// kernel: tile.12
= control target key start
LH: loop header
LB: loop body
LE: loop exit
PB: predicated region body
PF: predicated region fallthrough
CT: control target
= control target key end

     0   :  { %s22_s0 = inlined_call_operand.vmem [shape: f32[32], index: 0, kind: input, shape index: {}]   ;;  %s23_s1 = inlined_call_operand.vmem [shape: f32[4,32], index: 1, kind: output, shape index: {}]  }
   0x1   :  { %v4_v0 = vld [vmem:[%s22_s0] ss:$0 sm:$0xff] }
   0x2   :  { %5 = vst [vmem:[%s23_s1] sm:$0xf] %v4_v0 }

// kernel: tile.0
= control target key start
LH: loop header
LB: loop body
LE: loop exit
PB: predicated region body
PF: predicated region fallthrough
CT: control target
= control target key end

     0   :  { %s546_s8 = smov 125   ;;  %s547_s9 = smov 126   ;;  %vm7_vm0 = vcmask 7168   ;;  %s1101_s0 = inlined_call_operand.vmem [shape: f32[4,32], index: 0, kind: input, shape index: {}]   ;;  %s1102_s1 = inlined_call_operand.vmem [shape: f32[128,1], index: 1, kind: output, shape index: {}]  }
   0x1   :  { %v4_v0 = vld [vmem:[%s1101_s0] sm:$0xf]  ;;  %s545_s0 = smov 127   ;;  %s548_s10 = smov 124  }
   0x2   :  { %5 = vst [vmem:[#allocation0] sm:$0xf] %v4_v0  ;;  %s549_s11 = smov 123   ;;  %s550_s12 = smov 122  }
   0x3   :  { %s551_s13 = smov 121   ;;  %s552_s14 = smov 120  }
   0x4   :  { %s553_s15 = smov 119   ;;  %s554_s16 = smov 118  }
   0x5   :  { %s555_s17 = smov 117   ;;  %s556_s18 = smov 116  }
   0x6   :  { %s557_s19 = smov 115   ;;  %s558_s20 = smov 114  }
   0x7   :  { %s559_s21 = smov 113   ;;  %s560_s22 = smov 112  }
   0x8   :  { %s561_s23 = smov 111   ;;  %s562_s24 = smov 110  }
   0x9   :  { %v15_v1 = vld [vmem:[#allocation0] sm:$0xf]   ;;  %s563_s25 = smov 109   ;;  %s564_s26 = smov 108  }
   0xa   :  { %v39_v2 = vld [vmem:[#allocation0] sm:$0xf]   ;;  %16 = vrot.lane.b32.xlu0 %v15_v1, %s545_s0  ;;  %s565_s27 = smov 107   ;;  %s566_s28 = smov 106  }
   0xb   :  { %40 = vrot.lane.b32.xlu1 %v39_v2, %s546_s8  ;;  %v27_v3 = vld [vmem:[#allocation0] sm:$0xf]   ;;  %s567_s29 = smov 105   ;;  %s568_s30 = smov 104  }
   0xc   :  { %v51_v4 = vld [vmem:[#allocation0] sm:$0xf]  }
   0xd   :  { %v63_v5 = vld [vmem:[#allocation0] sm:$0xf]  }
   0xe   :  { %28 = vrot.lane.b32.xlu0 %v27_v3, %s547_s9  ;;  %v75_v6 = vld [vmem:[#allocation0] sm:$0xf]   ;;  %s569_s9 = smov 103  }
   0xf   :  { %52 = vrot.lane.b32.xlu1 %v51_v4, %s548_s10  ;;  %v87_v7 = vld [vmem:[#allocation0] sm:$0xf]   ;;  %s570_s10 = smov 102  }
  0x10   :  { %v99_v8 = vld [vmem:[#allocation0] sm:$0xf]  }
  0x11   :  { %v111_v9 = vld [vmem:[#allocation0] sm:$0xf]  }
  0x12   :  { %64 = vrot.lane.b32.xlu0 %v63_v5, %s549_s11  ;;  %v123_v10 = vld [vmem:[#allocation0] sm:$0xf]   ;;  %s571_s11 = smov 101  }
  0x13   :  { %76 = vrot.lane.b32.xlu1 %v75_v6, %s550_s12  ;;  %v135_v11 = vld [vmem:[#allocation0] sm:$0xf]   ;;  %s572_s12 = smov 100  }
  0x14   :  { %v147_v12 = vld [vmem:[#allocation0] sm:$0xf]  }
  0x15   :  { %v159_v13 = vld [vmem:[#allocation0] sm:$0xf]  }
  0x16   :  { %88 = vrot.lane.b32.xlu0 %v87_v7, %s551_s13  ;;  %v171_v14 = vld [vmem:[#allocation0] sm:$0xf]   ;;  %s573_s13 = smov 99  }
  0x17   :  { %100 = vrot.lane.b32.xlu1 %v99_v8, %s552_s14  ;;  %v183_v15 = vld [vmem:[#allocation0] sm:$0xf]   ;;  %s574_s14 = smov 98  }
  0x18   :  { %v195_v16 = vld [vmem:[#allocation0] sm:$0xf]  }
  0x19   :  { %v207_v17 = vld [vmem:[#allocation0] sm:$0xf]  }
  0x1a   :  { %112 = vrot.lane.b32.xlu0 %v111_v9, %s553_s15  ;;  %v219_v18 = vld [vmem:[#allocation0] sm:$0xf]   ;;  %s575_s15 = smov 97  }
  0x1b   :  { %124 = vrot.lane.b32.xlu1 %v123_v10, %s554_s16  ;;  %v231_v19 = vld [vmem:[#allocation0] sm:$0xf]  }
  0x1c   :  { %v243_v20 = vld [vmem:[#allocation0] sm:$0xf]  }
  0x1d   :  { %v255_v21 = vld [vmem:[#allocation0] sm:$0xf]  }
  0x1e   :  { %136 = vrot.lane.b32.xlu0 %v135_v11, %s555_s17  ;;  %v267_v22 = vld [vmem:[#allocation0] sm:$0xf]  }
  0x1f   :  { %148 = vrot.lane.b32.xlu1 %v147_v12, %s556_s18  ;;  %v279_v23 = vld [vmem:[#allocation0] sm:$0xf]  }
  0x20   :  { %v291_v24 = vld [vmem:[#allocation0] sm:$0xf]  }
  0x21   :  { %v303_v25 = vld [vmem:[#allocation0] sm:$0xf]  }
  0x22   :  { %160 = vrot.lane.b32.xlu0 %v159_v13, %s557_s19  ;;  %v315_v26 = vld [vmem:[#allocation0] sm:$0xf]  }
  0x23   :  { %172 = vrot.lane.b32.xlu1 %v171_v14, %s558_s20  ;;  %v6_v27 = vld [vmem:[#allocation0] sm:$0xf]  }
  0x24   :  { %8 = vst.msk [vmem:[%s1102_s1] sm:$0x1] %vm7_vm0, %v6_v27   ;;  %387 = vst.msk [vmem:[%s1102_s1 + $0x1f] sm:$0x2] %vm7_vm0, %v6_v27   ;;  %v327_v28 = vld [vmem:[#allocation0] sm:$0xf]  }
  0x25   :  { %388 = vst.msk [vmem:[%s1102_s1 + $0x3e] sm:$0x4] %vm7_vm0, %v6_v27   ;;  %389 = vst.msk [vmem:[%s1102_s1 + $0x5d] sm:$0x8] %vm7_vm0, %v6_v27   ;;  %v339_v29 = vld [vmem:[#allocation0] sm:$0xf]  }
  0x26   :  { %184 = vrot.lane.b32.xlu0 %v183_v15, %s559_s21  ;;  %v351_v30 = vld [vmem:[#allocation0] sm:$0xf]  }
  0x27   :  { %196 = vrot.lane.b32.xlu1 %v195_v16, %s560_s22  ;;  %v363_v31 = vld [vmem:[#allocation0] sm:$0xf]  }
  0x28   :  { %v375_v32 = vld [vmem:[#allocation0] sm:$0xf]  }
  0x2a   :  { %208 = vrot.lane.b32.xlu0 %v207_v17, %s561_s23 }
  0x2b   :  { %220 = vrot.lane.b32.xlu1 %v219_v18, %s562_s24 }
  0x2e   :  { %232 = vrot.lane.b32.xlu0 %v231_v19, %s563_s25 }
  0x2f   :  { %244 = vrot.lane.b32.xlu1 %v243_v20, %s564_s26 }
  0x32   :  { %256 = vrot.lane.b32.xlu0 %v255_v21, %s565_s27 }
  0x33   :  { %268 = vrot.lane.b32.xlu1 %v267_v22, %s566_s28 }
  0x36   :  { %280 = vrot.lane.b32.xlu0 %v279_v23, %s567_s29 }
  0x37   :  { %292 = vrot.lane.b32.xlu1 %v291_v24, %s568_s30 }
  0x3a   :  { %304 = vrot.lane.b32.xlu0 %v303_v25, %s569_s9 }
  0x3b   :  { %316 = vrot.lane.b32.xlu1 %v315_v26, %s570_s10 }
  0x3e   :  { %328 = vrot.lane.b32.xlu0 %v327_v28, %s571_s11 }
  0x3f   :  { %340 = vrot.lane.b32.xlu1 %v339_v29, %s572_s12 }
  0x42   :  { %352 = vrot.lane.b32.xlu0 %v351_v30, %s573_s13 }
  0x43   :  { %364 = vrot.lane.b32.xlu1 %v363_v31, %s574_s14 }
  0x46   :  { %376 = vrot.lane.b32.xlu0 %v375_v32, %s575_s15 }
  0x7c   :  { %v17_v33 = vpop.permute.xlu0 %16  }
  0x7d   :  { %v41_v34 = vpop.permute.xlu1 %40   ;;  %390 = vst.msk [vmem:[%s1102_s1 + $0x1] sm:$0x1] %vm7_vm0, %v17_v33   ;;  %391 = vst.msk [vmem:[%s1102_s1 + $0x20] sm:$0x2] %vm7_vm0, %v17_v33  }
  0x7e   :  { %392 = vst.msk [vmem:[%s1102_s1 + $0x3f] sm:$0x4] %vm7_vm0, %v17_v33   ;;  %393 = vst.msk [vmem:[%s1102_s1 + $0x5e] sm:$0x8] %vm7_vm0, %v17_v33  }
  0x7f   :  { %398 = vst.msk [vmem:[%s1102_s1 + $0x3] sm:$0x1] %vm7_vm0, %v41_v34   ;;  %399 = vst.msk [vmem:[%s1102_s1 + $0x22] sm:$0x2] %vm7_vm0, %v41_v34  }
  0x80   :  { %400 = vst.msk [vmem:[%s1102_s1 + $0x41] sm:$0x4] %vm7_vm0, %v41_v34   ;;  %401 = vst.msk [vmem:[%s1102_s1 + $0x60] sm:$0x8] %vm7_vm0, %v41_v34   ;;  %v29_v35 = vpop.permute.xlu0 %28  }
  0x81   :  { %v53_v36 = vpop.permute.xlu1 %52   ;;  %394 = vst.msk [vmem:[%s1102_s1 + $0x2] sm:$0x1] %vm7_vm0, %v29_v35   ;;  %395 = vst.msk [vmem:[%s1102_s1 + $0x21] sm:$0x2] %vm7_vm0, %v29_v35  }
  0x82   :  { %396 = vst.msk [vmem:[%s1102_s1 + $0x40] sm:$0x4] %vm7_vm0, %v29_v35   ;;  %397 = vst.msk [vmem:[%s1102_s1 + $0x5f] sm:$0x8] %vm7_vm0, %v29_v35  }
  0x83   :  { %402 = vst.msk [vmem:[%s1102_s1 + $0x4] sm:$0x1] %vm7_vm0, %v53_v36   ;;  %403 = vst.msk [vmem:[%s1102_s1 + $0x23] sm:$0x2] %vm7_vm0, %v53_v36  }
  0x84   :  { %404 = vst.msk [vmem:[%s1102_s1 + $0x42] sm:$0x4] %vm7_vm0, %v53_v36   ;;  %405 = vst.msk [vmem:[%s1102_s1 + $0x61] sm:$0x8] %vm7_vm0, %v53_v36   ;;  %v65_v37 = vpop.permute.xlu0 %64  }
  0x85   :  { %v77_v38 = vpop.permute.xlu1 %76   ;;  %406 = vst.msk [vmem:[%s1102_s1 + $0x5] sm:$0x1] %vm7_vm0, %v65_v37   ;;  %407 = vst.msk [vmem:[%s1102_s1 + $0x24] sm:$0x2] %vm7_vm0, %v65_v37  }
  0x86   :  { %408 = vst.msk [vmem:[%s1102_s1 + $0x43] sm:$0x4] %vm7_vm0, %v65_v37   ;;  %409 = vst.msk [vmem:[%s1102_s1 + $0x62] sm:$0x8] %vm7_vm0, %v65_v37  }
  0x87   :  { %410 = vst.msk [vmem:[%s1102_s1 + $0x6] sm:$0x1] %vm7_vm0, %v77_v38   ;;  %411 = vst.msk [vmem:[%s1102_s1 + $0x25] sm:$0x2] %vm7_vm0, %v77_v38  }
  0x88   :  { %412 = vst.msk [vmem:[%s1102_s1 + $0x44] sm:$0x4] %vm7_vm0, %v77_v38   ;;  %413 = vst.msk [vmem:[%s1102_s1 + $0x63] sm:$0x8] %vm7_vm0, %v77_v38   ;;  %v89_v39 = vpop.permute.xlu0 %88  }
  0x89   :  { %v101_v40 = vpop.permute.xlu1 %100   ;;  %414 = vst.msk [vmem:[%s1102_s1 + $0x7] sm:$0x1] %vm7_vm0, %v89_v39   ;;  %415 = vst.msk [vmem:[%s1102_s1 + $0x26] sm:$0x2] %vm7_vm0, %v89_v39  }
  0x8a   :  { %416 = vst.msk [vmem:[%s1102_s1 + $0x45] sm:$0x4] %vm7_vm0, %v89_v39   ;;  %417 = vst.msk [vmem:[%s1102_s1 + $0x64] sm:$0x8] %vm7_vm0, %v89_v39  }
  0x8b   :  { %418 = vst.msk [vmem:[%s1102_s1 + $0x8] sm:$0x1] %vm7_vm0, %v101_v40   ;;  %419 = vst.msk [vmem:[%s1102_s1 + $0x27] sm:$0x2] %vm7_vm0, %v101_v40  }
  0x8c   :  { %420 = vst.msk [vmem:[%s1102_s1 + $0x46] sm:$0x4] %vm7_vm0, %v101_v40   ;;  %421 = vst.msk [vmem:[%s1102_s1 + $0x65] sm:$0x8] %vm7_vm0, %v101_v40   ;;  %v113_v41 = vpop.permute.xlu0 %112  }
  0x8d   :  { %v125_v42 = vpop.permute.xlu1 %124   ;;  %422 = vst.msk [vmem:[%s1102_s1 + $0x9] sm:$0x1] %vm7_vm0, %v113_v41   ;;  %423 = vst.msk [vmem:[%s1102_s1 + $0x28] sm:$0x2] %vm7_vm0, %v113_v41  }
  0x8e   :  { %424 = vst.msk [vmem:[%s1102_s1 + $0x47] sm:$0x4] %vm7_vm0, %v113_v41   ;;  %425 = vst.msk [vmem:[%s1102_s1 + $0x66] sm:$0x8] %vm7_vm0, %v113_v41  }
  0x8f   :  { %426 = vst.msk [vmem:[%s1102_s1 + $0xa] sm:$0x1] %vm7_vm0, %v125_v42   ;;  %427 = vst.msk [vmem:[%s1102_s1 + $0x29] sm:$0x2] %vm7_vm0, %v125_v42  }
  0x90   :  { %428 = vst.msk [vmem:[%s1102_s1 + $0x48] sm:$0x4] %vm7_vm0, %v125_v42   ;;  %429 = vst.msk [vmem:[%s1102_s1 + $0x67] sm:$0x8] %vm7_vm0, %v125_v42   ;;  %v137_v43 = vpop.permute.xlu0 %136  }
  0x91   :  { %v149_v44 = vpop.permute.xlu1 %148   ;;  %430 = vst.msk [vmem:[%s1102_s1 + $0xb] sm:$0x1] %vm7_vm0, %v137_v43   ;;  %431 = vst.msk [vmem:[%s1102_s1 + $0x2a] sm:$0x2] %vm7_vm0, %v137_v43  }
  0x92   :  { %432 = vst.msk [vmem:[%s1102_s1 + $0x49] sm:$0x4] %vm7_vm0, %v137_v43   ;;  %433 = vst.msk [vmem:[%s1102_s1 + $0x68] sm:$0x8] %vm7_vm0, %v137_v43  }
  0x93   :  { %434 = vst.msk [vmem:[%s1102_s1 + $0xc] sm:$0x1] %vm7_vm0, %v149_v44   ;;  %435 = vst.msk [vmem:[%s1102_s1 + $0x2b] sm:$0x2] %vm7_vm0, %v149_v44  }
  0x94   :  { %436 = vst.msk [vmem:[%s1102_s1 + $0x4a] sm:$0x4] %vm7_vm0, %v149_v44   ;;  %437 = vst.msk [vmem:[%s1102_s1 + $0x69] sm:$0x8] %vm7_vm0, %v149_v44   ;;  %v161_v45 = vpop.permute.xlu0 %160  }
  0x95   :  { %v173_v46 = vpop.permute.xlu1 %172   ;;  %438 = vst.msk [vmem:[%s1102_s1 + $0xd] sm:$0x1] %vm7_vm0, %v161_v45   ;;  %439 = vst.msk [vmem:[%s1102_s1 + $0x2c] sm:$0x2] %vm7_vm0, %v161_v45  }
  0x96   :  { %440 = vst.msk [vmem:[%s1102_s1 + $0x4b] sm:$0x4] %vm7_vm0, %v161_v45   ;;  %441 = vst.msk [vmem:[%s1102_s1 + $0x6a] sm:$0x8] %vm7_vm0, %v161_v45  }
  0x97   :  { %442 = vst.msk [vmem:[%s1102_s1 + $0xe] sm:$0x1] %vm7_vm0, %v173_v46   ;;  %443 = vst.msk [vmem:[%s1102_s1 + $0x2d] sm:$0x2] %vm7_vm0, %v173_v46  }
  0x98   :  { %444 = vst.msk [vmem:[%s1102_s1 + $0x4c] sm:$0x4] %vm7_vm0, %v173_v46   ;;  %445 = vst.msk [vmem:[%s1102_s1 + $0x6b] sm:$0x8] %vm7_vm0, %v173_v46   ;;  %v185_v47 = vpop.permute.xlu0 %184  }
  0x99   :  { %v197_v48 = vpop.permute.xlu1 %196   ;;  %446 = vst.msk [vmem:[%s1102_s1 + $0xf] sm:$0x1] %vm7_vm0, %v185_v47   ;;  %447 = vst.msk [vmem:[%s1102_s1 + $0x2e] sm:$0x2] %vm7_vm0, %v185_v47  }
  0x9a   :  { %448 = vst.msk [vmem:[%s1102_s1 + $0x4d] sm:$0x4] %vm7_vm0, %v185_v47   ;;  %449 = vst.msk [vmem:[%s1102_s1 + $0x6c] sm:$0x8] %vm7_vm0, %v185_v47  }
  0x9b   :  { %450 = vst.msk [vmem:[%s1102_s1 + $0x10] sm:$0x1] %vm7_vm0, %v197_v48   ;;  %451 = vst.msk [vmem:[%s1102_s1 + $0x2f] sm:$0x2] %vm7_vm0, %v197_v48  }
  0x9c   :  { %452 = vst.msk [vmem:[%s1102_s1 + $0x4e] sm:$0x4] %vm7_vm0, %v197_v48   ;;  %453 = vst.msk [vmem:[%s1102_s1 + $0x6d] sm:$0x8] %vm7_vm0, %v197_v48   ;;  %v209_v49 = vpop.permute.xlu0 %208  }
  0x9d   :  { %v221_v50 = vpop.permute.xlu1 %220   ;;  %454 = vst.msk [vmem:[%s1102_s1 + $0x11] sm:$0x1] %vm7_vm0, %v209_v49   ;;  %455 = vst.msk [vmem:[%s1102_s1 + $0x30] sm:$0x2] %vm7_vm0, %v209_v49  }
  0x9e   :  { %456 = vst.msk [vmem:[%s1102_s1 + $0x4f] sm:$0x4] %vm7_vm0, %v209_v49   ;;  %457 = vst.msk [vmem:[%s1102_s1 + $0x6e] sm:$0x8] %vm7_vm0, %v209_v49  }
  0x9f   :  { %458 = vst.msk [vmem:[%s1102_s1 + $0x12] sm:$0x1] %vm7_vm0, %v221_v50   ;;  %459 = vst.msk [vmem:[%s1102_s1 + $0x31] sm:$0x2] %vm7_vm0, %v221_v50  }
  0xa0   :  { %460 = vst.msk [vmem:[%s1102_s1 + $0x50] sm:$0x4] %vm7_vm0, %v221_v50   ;;  %461 = vst.msk [vmem:[%s1102_s1 + $0x6f] sm:$0x8] %vm7_vm0, %v221_v50   ;;  %v233_v51 = vpop.permute.xlu0 %232  }
  0xa1   :  { %v245_v52 = vpop.permute.xlu1 %244   ;;  %462 = vst.msk [vmem:[%s1102_s1 + $0x13] sm:$0x1] %vm7_vm0, %v233_v51   ;;  %463 = vst.msk [vmem:[%s1102_s1 + $0x32] sm:$0x2] %vm7_vm0, %v233_v51  }
  0xa2   :  { %464 = vst.msk [vmem:[%s1102_s1 + $0x51] sm:$0x4] %vm7_vm0, %v233_v51   ;;  %465 = vst.msk [vmem:[%s1102_s1 + $0x70] sm:$0x8] %vm7_vm0, %v233_v51  }
  0xa3   :  { %466 = vst.msk [vmem:[%s1102_s1 + $0x14] sm:$0x1] %vm7_vm0, %v245_v52   ;;  %467 = vst.msk [vmem:[%s1102_s1 + $0x33] sm:$0x2] %vm7_vm0, %v245_v52  }
  0xa4   :  { %468 = vst.msk [vmem:[%s1102_s1 + $0x52] sm:$0x4] %vm7_vm0, %v245_v52   ;;  %469 = vst.msk [vmem:[%s1102_s1 + $0x71] sm:$0x8] %vm7_vm0, %v245_v52   ;;  %v257_v53 = vpop.permute.xlu0 %256  }
  0xa5   :  { %v269_v54 = vpop.permute.xlu1 %268   ;;  %470 = vst.msk [vmem:[%s1102_s1 + $0x15] sm:$0x1] %vm7_vm0, %v257_v53   ;;  %471 = vst.msk [vmem:[%s1102_s1 + $0x34] sm:$0x2] %vm7_vm0, %v257_v53  }
  0xa6   :  { %472 = vst.msk [vmem:[%s1102_s1 + $0x53] sm:$0x4] %vm7_vm0, %v257_v53   ;;  %473 = vst.msk [vmem:[%s1102_s1 + $0x72] sm:$0x8] %vm7_vm0, %v257_v53  }
  0xa7   :  { %474 = vst.msk [vmem:[%s1102_s1 + $0x16] sm:$0x1] %vm7_vm0, %v269_v54   ;;  %475 = vst.msk [vmem:[%s1102_s1 + $0x35] sm:$0x2] %vm7_vm0, %v269_v54  }
  0xa8   :  { %476 = vst.msk [vmem:[%s1102_s1 + $0x54] sm:$0x4] %vm7_vm0, %v269_v54   ;;  %477 = vst.msk [vmem:[%s1102_s1 + $0x73] sm:$0x8] %vm7_vm0, %v269_v54   ;;  %v281_v55 = vpop.permute.xlu0 %280  }
  0xa9   :  { %v293_v56 = vpop.permute.xlu1 %292   ;;  %478 = vst.msk [vmem:[%s1102_s1 + $0x17] sm:$0x1] %vm7_vm0, %v281_v55   ;;  %479 = vst.msk [vmem:[%s1102_s1 + $0x36] sm:$0x2] %vm7_vm0, %v281_v55  }
  0xaa   :  { %480 = vst.msk [vmem:[%s1102_s1 + $0x55] sm:$0x4] %vm7_vm0, %v281_v55   ;;  %481 = vst.msk [vmem:[%s1102_s1 + $0x74] sm:$0x8] %vm7_vm0, %v281_v55  }
  0xab   :  { %482 = vst.msk [vmem:[%s1102_s1 + $0x18] sm:$0x1] %vm7_vm0, %v293_v56   ;;  %483 = vst.msk [vmem:[%s1102_s1 + $0x37] sm:$0x2] %vm7_vm0, %v293_v56  }
  0xac   :  { %484 = vst.msk [vmem:[%s1102_s1 + $0x56] sm:$0x4] %vm7_vm0, %v293_v56   ;;  %485 = vst.msk [vmem:[%s1102_s1 + $0x75] sm:$0x8] %vm7_vm0, %v293_v56   ;;  %v305_v57 = vpop.permute.xlu0 %304  }
  0xad   :  { %v317_v58 = vpop.permute.xlu1 %316   ;;  %486 = vst.msk [vmem:[%s1102_s1 + $0x19] sm:$0x1] %vm7_vm0, %v305_v57   ;;  %487 = vst.msk [vmem:[%s1102_s1 + $0x38] sm:$0x2] %vm7_vm0, %v305_v57  }
  0xae   :  { %488 = vst.msk [vmem:[%s1102_s1 + $0x57] sm:$0x4] %vm7_vm0, %v305_v57   ;;  %489 = vst.msk [vmem:[%s1102_s1 + $0x76] sm:$0x8] %vm7_vm0, %v305_v57  }
  0xaf   :  { %490 = vst.msk [vmem:[%s1102_s1 + $0x1a] sm:$0x1] %vm7_vm0, %v317_v58   ;;  %491 = vst.msk [vmem:[%s1102_s1 + $0x39] sm:$0x2] %vm7_vm0, %v317_v58  }
  0xb0   :  { %492 = vst.msk [vmem:[%s1102_s1 + $0x58] sm:$0x4] %vm7_vm0, %v317_v58   ;;  %493 = vst.msk [vmem:[%s1102_s1 + $0x77] sm:$0x8] %vm7_vm0, %v317_v58   ;;  %v329_v59 = vpop.permute.xlu0 %328  }
  0xb1   :  { %v341_v60 = vpop.permute.xlu1 %340   ;;  %494 = vst.msk [vmem:[%s1102_s1 + $0x1b] sm:$0x1] %vm7_vm0, %v329_v59   ;;  %495 = vst.msk [vmem:[%s1102_s1 + $0x3a] sm:$0x2] %vm7_vm0, %v329_v59  }
  0xb2   :  { %496 = vst.msk [vmem:[%s1102_s1 + $0x59] sm:$0x4] %vm7_vm0, %v329_v59   ;;  %497 = vst.msk [vmem:[%s1102_s1 + $0x78] sm:$0x8] %vm7_vm0, %v329_v59  }
  0xb3   :  { %498 = vst.msk [vmem:[%s1102_s1 + $0x1c] sm:$0x1] %vm7_vm0, %v341_v60   ;;  %499 = vst.msk [vmem:[%s1102_s1 + $0x3b] sm:$0x2] %vm7_vm0, %v341_v60  }
  0xb4   :  { %500 = vst.msk [vmem:[%s1102_s1 + $0x5a] sm:$0x4] %vm7_vm0, %v341_v60   ;;  %501 = vst.msk [vmem:[%s1102_s1 + $0x79] sm:$0x8] %vm7_vm0, %v341_v60   ;;  %v353_v61 = vpop.permute.xlu0 %352  }
  0xb5   :  { %v365_v62 = vpop.permute.xlu1 %364   ;;  %502 = vst.msk [vmem:[%s1102_s1 + $0x1d] sm:$0x1] %vm7_vm0, %v353_v61   ;;  %503 = vst.msk [vmem:[%s1102_s1 + $0x3c] sm:$0x2] %vm7_vm0, %v353_v61  }
  0xb6   :  { %504 = vst.msk [vmem:[%s1102_s1 + $0x5b] sm:$0x4] %vm7_vm0, %v353_v61   ;;  %505 = vst.msk [vmem:[%s1102_s1 + $0x7a] sm:$0x8] %vm7_vm0, %v353_v61  }
  0xb7   :  { %506 = vst.msk [vmem:[%s1102_s1 + $0x1e] sm:$0x1] %vm7_vm0, %v365_v62   ;;  %507 = vst.msk [vmem:[%s1102_s1 + $0x3d] sm:$0x2] %vm7_vm0, %v365_v62  }
  0xb8   :  { %508 = vst.msk [vmem:[%s1102_s1 + $0x5c] sm:$0x4] %vm7_vm0, %v365_v62   ;;  %509 = vst.msk [vmem:[%s1102_s1 + $0x7b] sm:$0x8] %vm7_vm0, %v365_v62   ;;  %v377_v63 = vpop.permute.xlu0 %376  }
  0xb9   :  { %510 = vst.msk [vmem:[%s1102_s1 + $0x1f] sm:$0x1] %vm7_vm0, %v377_v63   ;;  %511 = vst.msk [vmem:[%s1102_s1 + $0x3e] sm:$0x2] %vm7_vm0, %v377_v63  }
  0xba   :  { %512 = vst.msk [vmem:[%s1102_s1 + $0x5d] sm:$0x4] %vm7_vm0, %v377_v63   ;;  %513 = vst.msk [vmem:[%s1102_s1 + $0x7c] sm:$0x8] %vm7_vm0, %v377_v63  }

// kernel: tile.17
= control target key start
LH: loop header
LB: loop body
LE: loop exit
PB: predicated region body
PF: predicated region fallthrough
CT: control target
= control target key end

     0   :  { %s20_s0 = inlined_call_operand.<no memory space> [shape: f32[], index: 0, kind: input, shape index: {}]   ;;  %s21_s1 = inlined_call_operand.vmem [shape: f32[4,1], index: 1, kind: output, shape index: {}]  }
   0x1   :  { %v2_v0 = vstv %s20_s0 }
   0x2   :  { %3 = vst [vmem:[%s21_s1] sm:$0xf] %v2_v0 }

// kernel: convnet_forward.7
= control target key start
LH: loop header
LB: loop body
LE: loop exit
PB: predicated region body
PF: predicated region fallthrough
CT: control target
= control target key end

     0   :  { %v1334_v1 = vmov 0   ;;  %vm647_vm0 = vcmask 523264   ;;  %s1717_s0 = inlined_call_operand.vmem [shape: bf16[576,128], index: 0, kind: input, shape index: {}]   ;;  %s1718_s1 = inlined_call_operand.vmem [shape: bf16[128,576], index: 1, kind: input, shape index: {}]   ;;  %s1719_s2 = inlined_call_operand.vmem [shape: f32[128,1], index: 2, kind: input, shape index: {}]   ;;  %s1720_s3 = inlined_call_operand.vmem [shape: f32[128,128], index: 3, kind: output, shape index: {}]  }
   0x1   :  { %v1242_v0 = vld [vmem:[%s1717_s0 + $0x40] sm:$0xff]   ;;  %1240 = vset.pattern.permute.xlu0 %v1334_v1  ;;  %1241 = vset.pattern.permute.xlu1 %v1334_v1  ;;  %v1246_v5 = vld [vmem:[%s1717_s0 + $0x48] sm:$0xff]   ;;  %v1250_v9 = vld [vmem:[%s1717_s0 + $0x50] sm:$0xff]  }
   0x2   :  { %v1243_v2 = vld [vmem:[%s1717_s0 + $0xc0] sm:$0xff]   ;;  %1067 = vmatprep.subr.bf16.mxu0 %v1242_v0  ;;  %v1247_v6 = vld [vmem:[%s1717_s0 + $0xc8] sm:$0xff]   ;;  %v1251_v10 = vld [vmem:[%s1717_s0 + $0xd0] sm:$0xff]  }
   0x3   :  { %v1244_v3 = vld [vmem:[%s1717_s0] sm:$0xff]   ;;  %1131 = vmatprep.subr.bf16.mxu1 %v1243_v2  ;;  %v1248_v7 = vld [vmem:[%s1717_s0 + $0x8] sm:$0xff]   ;;  %v1252_v11 = vld [vmem:[%s1717_s0 + $0x10] sm:$0xff]  }
   0x4   :  { %v1245_v4 = vld [vmem:[%s1717_s0 + $0x80] sm:$0xff]   ;;  %1068 = vmatpush3.bf16.msra.mxu0 %v1244_v3  ;;  %v1249_v8 = vld [vmem:[%s1717_s0 + $0x88] sm:$0xff]   ;;  %v1253_v12 = vld [vmem:[%s1717_s0 + $0x90] sm:$0xff]  }
   0x5   :  { %1132 = vmatpush3.bf16.msra.mxu1 %v1245_v4  ;;  %1069 = vmatprep.subr.bf16.mxu0 %v1246_v5  ;;  %v1254_v13 = vld [vmem:[%s1717_s0 + $0x58] sm:$0xff]   ;;  %v1258_v17 = vld [vmem:[%s1717_s0 + $0x60] sm:$0xff]   ;;  %v1262_v21 = vld [vmem:[%s1717_s0 + $0x68] sm:$0xff]  }
   0x6   :  { %1133 = vmatprep.subr.bf16.mxu1 %v1247_v6  ;;  %v1255_v14 = vld [vmem:[%s1717_s0 + $0xd8] sm:$0xff]   ;;  %v1259_v18 = vld [vmem:[%s1717_s0 + $0xe0] sm:$0xff]   ;;  %v1263_v22 = vld [vmem:[%s1717_s0 + $0xe8] sm:$0xff]  }
   0x7   :  { %v1256_v15 = vld [vmem:[%s1717_s0 + $0x18] sm:$0xff]   ;;  %v1260_v19 = vld [vmem:[%s1717_s0 + $0x20] sm:$0xff]   ;;  %v1264_v23 = vld [vmem:[%s1717_s0 + $0x28] sm:$0xff]  }
   0x8   :  { %1070 = vmatpush3.bf16.msra.mxu0 %v1248_v7  ;;  %v1257_v16 = vld [vmem:[%s1717_s0 + $0x98] sm:$0xff]   ;;  %v1261_v20 = vld [vmem:[%s1717_s0 + $0xa0] sm:$0xff]   ;;  %v1265_v24 = vld [vmem:[%s1717_s0 + $0xa8] sm:$0xff]  }
   0x9   :  { %1134 = vmatpush3.bf16.msra.mxu1 %v1249_v8  ;;  %1071 = vmatprep.subr.bf16.mxu0 %v1250_v9  ;;  %v1266_v25 = vld [vmem:[%s1717_s0 + $0x70] sm:$0xff]   ;;  %v1270_v29 = vld [vmem:[%s1717_s0 + $0x78] sm:$0xff]   ;;  %v1279_v36 = vld [vmem:[%s1718_s1 + $0xc] ss:$20 sps:$4 sm:$0xff]  }
   0xa   :  { %1135 = vmatprep.subr.bf16.mxu1 %v1251_v10  ;;  %v1267_v26 = vld [vmem:[%s1717_s0 + $0xf0] sm:$0xff]   ;;  %v1271_v30 = vld [vmem:[%s1717_s0 + $0xf8] sm:$0xff]   ;;  %v1280_v37 = vld [vmem:[%s1717_s0 + $0x100] sm:$0xff]   ;;  %801 = vmatprep.mubr.bf16.mxu1 %v1279_v36 }
   0xb   :  { %v1268_v27 = vld [vmem:[%s1717_s0 + $0x30] sm:$0xff]   ;;  %v1272_v31 = vld [vmem:[%s1717_s0 + $0x38] sm:$0xff]   ;;  %v1281_v38 = vld [vmem:[%s1718_s1 + $0x2c] ss:$20 sps:$4 sm:$0xff]  }
   0xc   :  { %1072 = vmatpush3.bf16.msra.mxu0 %v1252_v11  ;;  %v1269_v28 = vld [vmem:[%s1717_s0 + $0xb0] sm:$0xff]   ;;  %v1273_v32 = vld [vmem:[%s1717_s0 + $0xb8] sm:$0xff]   ;;  %v1293_v43 = vld [vmem:[%s1717_s0 + $0x108] sm:$0xff]  }
   0xd   :  { %1136 = vmatpush3.bf16.msra.mxu1 %v1253_v12  ;;  %1073 = vmatprep.subr.bf16.mxu0 %v1254_v13  ;;  %v1274_v33 = vld [vmem:[%s1718_s1] ss:$20 sps:$4 sm:$0xff]   ;;  %v1276_v34 = vld [vmem:[%s1718_s1 + $0x4] ss:$20 sps:$4 sm:$0xff]   ;;  %v1277_v35 = vld [vmem:[%s1718_s1 + $0x8] ss:$20 sps:$4 sm:$0xff]  }
   0xe   :  { %1137 = vmatprep.subr.bf16.mxu1 %v1255_v14  ;;  %704 = vmatprep.mubr.bf16.mxu0 %v1276_v34  ;;  %v1283_v39 = vld [vmem:[%s1718_s1 + $0x34] ss:$20 sps:$4 sm:$0xff]   ;;  %v1286_v41 = vld [vmem:[%s1718_s1 + $0x30] ss:$20 sps:$4 sm:$0xff]   ;;  %v1292_v46 = vld [vmem:[%s1718_s1 + $0x58] ss:$20 sps:$4 sm:$0xff]  }
   0xf   :  { %v1285_v40 = vld [vmem:[%s1718_s1 + $0x28] ss:$20 sps:$4 sm:$0xff]   ;;  %v1291_v45 = vld [vmem:[%s1718_s1 + $0x50] ss:$20 sps:$4 sm:$0xff]   ;;  %v1298_v51 = vld [vmem:[%s1718_s1 + $0x78] ss:$20 sps:$4 sm:$0xff]  }
  0x10   :  { %1074 = vmatpush3.bf16.msra.mxu0 %v1256_v15  ;;  %v1287_v42 = vld [vmem:[%s1718_s1 + $0x54] ss:$20 sps:$4 sm:$0xff]   ;;  %v1289_v44 = vld [vmem:[%s1718_s1 + $0x5c] ss:$20 sps:$4 sm:$0xff]   ;;  %v1296_v49 = vld [vmem:[%s1718_s1 + $0x84] ss:$20 sps:$4 sm:$0xff]  }
  0x11   :  { %1138 = vmatpush3.bf16.msra.mxu1 %v1257_v16  ;;  %1075 = vmatprep.subr.bf16.mxu0 %v1258_v17  ;;  %v1306_v47 = vld [vmem:[%s1717_s0 + $0x110] sm:$0xff]   ;;  %v1319_v50 = vld [vmem:[%s1717_s0 + $0x118] sm:$0xff]   ;;  %v1302_v54 = vld [vmem:[%s1718_s1 + $0xac] ss:$20 sps:$4 sm:$0xff]  }
  0x12   :  { %1139 = vmatprep.subr.bf16.mxu1 %v1259_v18  ;;  %v1294_v48 = vld [vmem:[%s1718_s1 + $0x7c] ss:$20 sps:$4 sm:$0xff]   ;;  %v1299_v52 = vld [vmem:[%s1718_s1 + $0x80] ss:$20 sps:$4 sm:$0xff]   ;;  %v1300_v53 = vld [vmem:[%s1718_s1 + $0xa4] ss:$20 sps:$4 sm:$0xff]  }
  0x13   :  { %v1304_v55 = vld [vmem:[%s1718_s1 + $0xa0] ss:$20 sps:$4 sm:$0xff]   ;;  %v1305_v56 = vld [vmem:[%s1718_s1 + $0xa8] ss:$20 sps:$4 sm:$0xff]   ;;  %v1312_v2 = vld [vmem:[%s1718_s1 + $0xd0] ss:$20 sps:$4 sm:$0xff]  }
  0x14   :  { %1076 = vmatpush3.bf16.msra.mxu0 %v1260_v19  ;;  %v1307_v57 = vld [vmem:[%s1718_s1 + $0xcc] ss:$20 sps:$4 sm:$0xff]   ;;  %v1309_v59 = vld [vmem:[%s1718_s1 + $0xd4] ss:$20 sps:$4 sm:$0xff]   ;;  %v138_v62 = vld [vmem:[%s1719_s2 + $0x18] sm:$0xff] }
  0x15   :  { %1140 = vmatpush3.bf16.msra.mxu1 %v1261_v20  ;;  %1077 = vmatprep.subr.bf16.mxu0 %v1262_v21  ;;  %v135_v58 = vld [vmem:[%s1719_s2] sm:$0xff]  ;;  %v137_v60 = vld [vmem:[%s1719_s2 + $0x10] sm:$0xff]  ;;  %v136_v61 = vld [vmem:[%s1719_s2 + $0x8] sm:$0xff] }
  0x16   :  { %1141 = vmatprep.subr.bf16.mxu1 %v1263_v22  ;;  %153 = vperm.xlu0 %1240, %v135_v58   ;;  %v139_v63 = vld [vmem:[%s1719_s2 + $0x20] sm:$0xff]  ;;  %v1311_v0 = vld [vmem:[%s1718_s1 + $0xc8] ss:$20 sps:$4 sm:$0xff]   ;;  %v141_v5 = vld [vmem:[%s1719_s2 + $0x30] sm:$0xff] }
  0x17   :  { %163 = vperm.xlu1 %1241, %v137_v60   ;;  %v140_v1 = vld [vmem:[%s1719_s2 + $0x28] sm:$0xff]  ;;  %v1315_v4 = vld [vmem:[%s1718_s1 + $0xfc] ss:$20 sps:$4 sm:$0xff]   ;;  %v143_v7 = vld [vmem:[%s1719_s2 + $0x40] sm:$0xff] }
  0x18   :  { %1078 = vmatpush3.bf16.msra.mxu0 %v1264_v23  ;;  %v1313_v3 = vld [vmem:[%s1718_s1 + $0xf4] ss:$20 sps:$4 sm:$0xff]   ;;  %v142_v6 = vld [vmem:[%s1719_s2 + $0x38] sm:$0xff]  ;;  %v1317_v8 = vld [vmem:[%s1718_s1 + $0xf0] ss:$20 sps:$4 sm:$0xff]  }
  0x19   :  { %1142 = vmatpush3.bf16.msra.mxu1 %v1265_v24  ;;  %1079 = vmatprep.subr.bf16.mxu0 %v1266_v25  ;;  %v144_v9 = vld [vmem:[%s1719_s2 + $0x48] sm:$0xff]  ;;  %v1320_v11 = vld [vmem:[%s1718_s1 + $0x11c] ss:$20 sps:$4 sm:$0xff]   ;;  %v1322_v12 = vld [vmem:[%s1718_s1 + $0x124] ss:$20 sps:$4 sm:$0xff]  }
  0x1a   :  { %1143 = vmatprep.subr.bf16.mxu1 %v1267_v26  ;;  %158 = vperm.xlu0 %1240, %v136_v61   ;;  %v1318_v10 = vld [vmem:[%s1718_s1 + $0xf8] ss:$20 sps:$4 sm:$0xff]   ;;  %v145_v13 = vld [vmem:[%s1719_s2 + $0x50] sm:$0xff]  ;;  %v147_v15 = vld [vmem:[%s1719_s2 + $0x60] sm:$0xff] }
  0x1b   :  { %168 = vperm.xlu1 %1241, %v138_v62   ;;  %v146_v14 = vld [vmem:[%s1719_s2 + $0x58] sm:$0xff]  ;;  %v148_v17 = vld [vmem:[%s1719_s2 + $0x68] sm:$0xff]  ;;  %v1325_v18 = vld [vmem:[%s1718_s1 + $0x120] ss:$20 sps:$4 sm:$0xff]  }
  0x1c   :  { %1080 = vmatpush3.bf16.msra.mxu0 %v1268_v27  ;;  %v1324_v16 = vld [vmem:[%s1718_s1 + $0x118] ss:$20 sps:$4 sm:$0xff]   ;;  %v1326_v19 = vld [vmem:[%s1718_s1 + $0x10] ss:$20 sps:$4 sm:$0xff]   ;;  %v1330_v25 = vld [vmem:[%s1718_s1 + $0x60] ss:$20 sps:$4 sm:$0xff]  }
  0x1d   :  { %1144 = vmatpush3.bf16.msra.mxu1 %v1269_v28  ;;  %1081 = vmatprep.subr.bf16.mxu0 %v1270_v29  ;;  %v1327_v20 = vld [vmem:[%s1718_s1 + $0xb0] ss:$20 sps:$4 sm:$0xff]   ;;  %v150_v22 = vld [vmem:[%s1719_s2 + $0x78] sm:$0xff]  ;;  %v1331_v26 = vld [vmem:[%s1718_s1 + $0x100] ss:$20 sps:$4 sm:$0xff]  }
  0x1e   :  { %1145 = vmatprep.subr.bf16.mxu1 %v1271_v30  ;;  %173 = vperm.xlu0 %1240, %v139_v63   ;;  %v149_v21 = vld [vmem:[%s1719_s2 + $0x70] sm:$0xff]  ;;  %v1328_v23 = vld [vmem:[%s1718_s1 + $0x38] ss:$20 sps:$4 sm:$0xff]   ;;  %v1332_v27 = vld [vmem:[%s1718_s1 + $0x88] ss:$20 sps:$4 sm:$0xff]  }
  0x1f   :  { %178 = vperm.xlu1 %1241, %v140_v1   ;;  %v1329_v24 = vld [vmem:[%s1718_s1 + $0xd8] ss:$20 sps:$4 sm:$0xff]   ;;  %v1333_v28 = vld [vmem:[%s1718_s1 + $0x128] ss:$20 sps:$4 sm:$0xff]  }
  0x20   :  { %1082 = vmatpush3.bf16.msra.mxu0 %v1272_v31 }
  0x21   :  { %1146 = vmatpush3.bf16.msra.mxu1 %v1273_v32  ;;  %1207 = vmatprep.subr.bf16.mxu0 %v1280_v37 }
  0x22   :  { %1231 = vmatprep.subr.bf16.mxu1 %v1280_v37  ;;  %183 = vperm.xlu0 %1240, %v141_v5  }
  0x23   :  { %705 = vmatmul.mubr.bf16.vlgmr.msra.gmra.mrb[0].mxu0 %v1274_v33  ;;  %188 = vperm.xlu1 %1241, %v142_v6  }
  0x24   :  { %802 = vmatmul.mubr.bf16.vlgmr.msra.gmra.mrb[0].mxu1 %v1277_v35  ;;  %1208 = vmatpush3.bf16.msra.mxu0 %v1280_v37 }
  0x25   :  { %1235 = vmatpush3.bf16.msra.mxu1 %v1280_v37  ;;  %712 = vmatprep.mubr.bf16.mxu0 %v1281_v38 }
  0x26   :  { %809 = vmatprep.mubr.bf16.mxu1 %v1283_v39  ;;  %1209 = vmatprep.subr.bf16.mxu0 %v1293_v43 }
  0x27   :  { %1232 = vmatprep.subr.bf16.mxu1 %v1293_v43  ;;  %193 = vperm.xlu0 %1240, %v143_v7  }
  0x28   :  { %1210 = vmatpush3.bf16.msra.mxu0 %v1293_v43  ;;  %198 = vperm.xlu1 %1241, %v144_v9  }
  0x29   :  { %1236 = vmatpush3.bf16.msra.mxu1 %v1293_v43  ;;  %1211 = vmatprep.subr.bf16.mxu0 %v1306_v47 }
  0x2a   :  { %1233 = vmatprep.subr.bf16.mxu1 %v1306_v47 }
  0x2b   :  { %713 = vmatmul.mubr.bf16.gmra.mrb[4].mxu0 %v1285_v40  ;;  %203 = vperm.xlu0 %1240, %v145_v13  }
  0x2c   :  { %810 = vmatmul.mubr.bf16.gmra.mrb[4].mxu1 %v1286_v41  ;;  %720 = vmatprep.mubr.bf16.mxu0 %v1287_v42 }
  0x2d   :  { %817 = vmatprep.mubr.bf16.mxu1 %v1289_v44  ;;  %1212 = vmatpush3.bf16.msra.mxu0 %v1306_v47 }
  0x2e   :  { %1237 = vmatpush3.bf16.msra.mxu1 %v1306_v47  ;;  %1213 = vmatprep.subr.bf16.mxu0 %v1319_v50 }
  0x2f   :  { %1234 = vmatprep.subr.bf16.mxu1 %v1319_v50  ;;  %208 = vperm.xlu1 %1241, %v146_v14  }
  0x30   :  { %213 = vperm.xlu0 %1240, %v147_v15  }
  0x31   :  { %1214 = vmatpush3.bf16.msra.mxu0 %v1319_v50 }
  0x32   :  { %1238 = vmatpush3.bf16.msra.mxu1 %v1319_v50 }
  0x33   :  { %721 = vmatmul.mubr.bf16.gmra.mrb[8].mxu0 %v1291_v45  ;;  %218 = vperm.xlu1 %1241, %v148_v17  }
  0x34   :  { %818 = vmatmul.mubr.bf16.gmra.mrb[8].mxu1 %v1292_v46  ;;  %728 = vmatprep.mubr.bf16.mxu0 %v1294_v48 }
  0x35   :  { %825 = vmatprep.mubr.bf16.mxu1 %v1296_v49  ;;  %223 = vperm.xlu0 %1240, %v149_v21  }
  0x37   :  { %228 = vperm.xlu1 %1241, %v150_v22  }
  0x3b   :  { %729 = vmatmul.mubr.bf16.gmra.mrb[12].mxu0 %v1298_v51 }
  0x3c   :  { %826 = vmatmul.mubr.bf16.gmra.mrb[12].mxu1 %v1299_v52  ;;  %736 = vmatprep.mubr.bf16.mxu0 %v1300_v53 }
  0x3d   :  { %833 = vmatprep.mubr.bf16.mxu1 %v1302_v54 }
  0x43   :  { %737 = vmatmul.mubr.bf16.gmra.mrb[16].mxu0 %v1304_v55 }
  0x44   :  { %834 = vmatmul.mubr.bf16.gmra.mrb[16].mxu1 %v1305_v56  ;;  %744 = vmatprep.mubr.bf16.mxu0 %v1307_v57 }
  0x45   :  { %841 = vmatprep.mubr.bf16.mxu1 %v1309_v59 }
  0x4b   :  { %745 = vmatmul.mubr.bf16.gmra.mrb[20].mxu0 %v1311_v0 }
  0x4c   :  { %842 = vmatmul.mubr.bf16.gmra.mrb[20].mxu1 %v1312_v2  ;;  %752 = vmatprep.mubr.bf16.mxu0 %v1313_v3 }
  0x4d   :  { %849 = vmatprep.mubr.bf16.mxu1 %v1315_v4 }
  0x53   :  { %753 = vmatmul.mubr.bf16.gmra.mrb[24].mxu0 %v1317_v8 }
  0x54   :  { %850 = vmatmul.mubr.bf16.gmra.mrb[24].mxu1 %v1318_v10  ;;  %760 = vmatprep.mubr.bf16.mxu0 %v1320_v11 }
  0x55   :  { %857 = vmatprep.mubr.bf16.mxu1 %v1322_v12 }
  0x5b   :  { %761 = vmatmul.mubr.bf16.gmra.mrb[28].mxu0 %v1324_v16 }
  0x5c   :  { %858 = vmatmul.mubr.bf16.gmra.mrb[28].mxu1 %v1325_v18  ;;  %1215 = vmatprep.mubr.msk.bf16.mxu0 %vm647_vm0, %v1326_v19 }
  0x5d   :  { %1223 = vmatprep.mubr.msk.bf16.mxu1 %vm647_vm0, %v1327_v20 }
  0x63   :  { %1216 = vmatmul.mubr.msk.bf16.vlgmr.msra.gmra.mrb[32].mxu0 %vm647_vm0, %v1328_v23 }
  0x64   :  { %1224 = vmatmul.mubr.msk.bf16.vlgmr.msra.gmra.mrb[32].mxu1 %vm647_vm0, %v1329_v24  ;;  %1219 = vmatprep.mubr.msk.bf16.mxu0 %vm647_vm0, %v1330_v25 }
  0x65   :  { %1227 = vmatprep.mubr.msk.bf16.mxu1 %vm647_vm0, %v1331_v26 }
  0x6b   :  { %1220 = vmatmul.mubr.msk.bf16.gmra.mrb[36].mxu0 %vm647_vm0, %v1332_v27 }
  0x6c   :  { %1228 = vmatmul.mubr.msk.bf16.gmra.mrb[36].mxu1 %vm647_vm0, %v1333_v28 }
  0x95   :  { %v154_v29 = vpop.permute.xlu0 %153 }
  0x96   :  { %v164_v30 = vpop.permute.xlu1 %163 }
  0x99   :  { %v159_v32 = vpop.permute.xlu0 %158 }
  0x9a   :  { %v169_v48 = vpop.permute.xlu1 %168 }
  0x9d   :  { %v174_v0 = vpop.permute.xlu0 %173 }
  0x9e   :  { %v179_v2 = vpop.permute.xlu1 %178 }
  0xa1   :  { %v184_v19 = vpop.permute.xlu0 %183 }
  0xf6   :  { %v1083_v31 = vpop.f32.mrb[0].mxu0 }
  0xf7   :  { %v1147_v33 = vpop.f32.mrb[0].mxu1  ;;  %v1084_v34 = vpop.f32.mrb[1].mxu0 }
  0xf8   :  { %v1085_v35 = vadd.f32 %v1084_v34, %v1083_v31  ;;  %v1148_v36 = vpop.f32.mrb[1].mxu1  ;;  %v1086_v37 = vpop.f32.mrb[2].mxu0 }
  0xf9   :  { %v1149_v38 = vadd.f32 %v1148_v36, %v1147_v33  ;;  %v1150_v39 = vpop.f32.mrb[2].mxu1  ;;  %v1087_v40 = vpop.f32.mrb[3].mxu0 }
  0xfa   :  { %v707_v41 = vadd.f32 %v1085_v35, %v154_v29  ;;  %v1088_v42 = vadd.f32 %v1087_v40, %v1086_v37  ;;  %v1151_v43 = vpop.f32.mrb[3].mxu1  ;;  %v189_v33 = vpop.permute.xlu1 %188 }
  0xfb   :  { %v1152_v44 = vadd.f32 %v1151_v43, %v1150_v39  ;;  %v194_v36 = vpop.permute.xlu0 %193 }
  0xfc   :  { %v710_v45 = vadd.f32 %v1088_v42, %v159_v32  ;;  %v1639_v46 = vadd.f32 %v1149_v38, %v707_v41 }
  0xfe   :  { %v1089_v47 = vpop.f32.mrb[4].mxu0  ;;  %v1641_v49 = vadd.f32 %v1152_v44, %v710_v45 }
  0xff   :  { %v1153_v50 = vpop.f32.mrb[4].mxu1  ;;  %v1090_v51 = vpop.f32.mrb[5].mxu0 }
 0x100   :  { %v1091_v52 = vadd.f32 %v1090_v51, %v1089_v47  ;;  %v1154_v53 = vpop.f32.mrb[5].mxu1  ;;  %v1092_v54 = vpop.f32.mrb[6].mxu0 }
 0x101   :  { %v1155_v55 = vadd.f32 %v1154_v53, %v1153_v50  ;;  %v1156_v56 = vpop.f32.mrb[6].mxu1  ;;  %v1093_v57 = vpop.f32.mrb[7].mxu0 }
 0x102   :  { %v715_v58 = vadd.f32 %v1091_v52, %v164_v30  ;;  %v1094_v59 = vadd.f32 %v1093_v57, %v1092_v54  ;;  %v1157_v60 = vpop.f32.mrb[7].mxu1  ;;  %v199_v52 = vpop.permute.xlu1 %198 }
 0x103   :  { %v1158_v61 = vadd.f32 %v1157_v60, %v1156_v56  ;;  %v204_v56 = vpop.permute.xlu0 %203 }
 0x104   :  { %v718_v62 = vadd.f32 %v1094_v59, %v169_v48  ;;  %v1643_v63 = vadd.f32 %v1155_v55, %v715_v58 }
 0x106   :  { %v1095_v1 = vpop.f32.mrb[8].mxu0  ;;  %v1645_v3 = vadd.f32 %v1158_v61, %v718_v62 }
 0x107   :  { %v1159_v4 = vpop.f32.mrb[8].mxu1  ;;  %v1096_v5 = vpop.f32.mrb[9].mxu0 }
 0x108   :  { %v1097_v6 = vadd.f32 %v1096_v5, %v1095_v1  ;;  %v1160_v7 = vpop.f32.mrb[9].mxu1  ;;  %v1098_v8 = vpop.f32.mrb[10].mxu0 }
 0x109   :  { %v1161_v9 = vadd.f32 %v1160_v7, %v1159_v4  ;;  %v1162_v10 = vpop.f32.mrb[10].mxu1  ;;  %v1099_v11 = vpop.f32.mrb[11].mxu0 }
 0x10a   :  { %v723_v12 = vadd.f32 %v1097_v6, %v174_v0  ;;  %v1100_v13 = vadd.f32 %v1099_v11, %v1098_v8  ;;  %v1163_v14 = vpop.f32.mrb[11].mxu1  ;;  %v209_v8 = vpop.permute.xlu1 %208 }
 0x10b   :  { %v1164_v15 = vadd.f32 %v1163_v14, %v1162_v10 }
 0x10c   :  { %v726_v16 = vadd.f32 %v1100_v13, %v179_v2  ;;  %v1647_v17 = vadd.f32 %v1161_v9, %v723_v12  ;;  %v214_v12 = vpop.permute.xlu0 %213 }
 0x10e   :  { %v1101_v18 = vpop.f32.mrb[12].mxu0  ;;  %v1649_v20 = vadd.f32 %v1164_v15, %v726_v16 }
 0x10f   :  { %v1165_v21 = vpop.f32.mrb[12].mxu1  ;;  %v1102_v22 = vpop.f32.mrb[13].mxu0 }
 0x110   :  { %v1103_v23 = vadd.f32 %v1102_v22, %v1101_v18  ;;  %v1166_v24 = vpop.f32.mrb[13].mxu1  ;;  %v1104_v25 = vpop.f32.mrb[14].mxu0 }
 0x111   :  { %v1167_v26 = vadd.f32 %v1166_v24, %v1165_v21  ;;  %v1168_v27 = vpop.f32.mrb[14].mxu1  ;;  %v1105_v28 = vpop.f32.mrb[15].mxu0 }
 0x112   :  { %v731_v29 = vadd.f32 %v1103_v23, %v184_v19  ;;  %v1106_v30 = vadd.f32 %v1105_v28, %v1104_v25  ;;  %v1169_v31 = vpop.f32.mrb[15].mxu1  ;;  %v219_v28 = vpop.permute.xlu1 %218 }
 0x113   :  { %v1170_v32 = vadd.f32 %v1169_v31, %v1168_v27 }
 0x114   :  { %v734_v34 = vadd.f32 %v1106_v30, %v189_v33  ;;  %v1651_v35 = vadd.f32 %v1167_v26, %v731_v29 }
 0x116   :  { %v1107_v37 = vpop.f32.mrb[16].mxu0  ;;  %v1653_v38 = vadd.f32 %v1170_v32, %v734_v34  ;;  %v224_v32 = vpop.permute.xlu0 %223 }
 0x117   :  { %v1171_v39 = vpop.f32.mrb[16].mxu1  ;;  %v1108_v40 = vpop.f32.mrb[17].mxu0 }
 0x118   :  { %v1109_v41 = vadd.f32 %v1108_v40, %v1107_v37  ;;  %v1172_v42 = vpop.f32.mrb[17].mxu1  ;;  %v1110_v43 = vpop.f32.mrb[18].mxu0 }
 0x119   :  { %v1173_v44 = vadd.f32 %v1172_v42, %v1171_v39  ;;  %v1174_v45 = vpop.f32.mrb[18].mxu1  ;;  %v1111_v47 = vpop.f32.mrb[19].mxu0 }
 0x11a   :  { %v739_v48 = vadd.f32 %v1109_v41, %v194_v36  ;;  %v1112_v50 = vadd.f32 %v1111_v47, %v1110_v43  ;;  %v1175_v51 = vpop.f32.mrb[19].mxu1 }
 0x11b   :  { %v1176_v53 = vadd.f32 %v1175_v51, %v1174_v45 }
 0x11c   :  { %v742_v54 = vadd.f32 %v1112_v50, %v199_v52  ;;  %v1655_v55 = vadd.f32 %v1173_v44, %v739_v48  ;;  %v229_v50 = vpop.permute.xlu1 %228 }
 0x11e   :  { %v1113_v57 = vpop.f32.mrb[20].mxu0  ;;  %v1657_v58 = vadd.f32 %v1176_v53, %v742_v54 }
 0x11f   :  { %v1177_v59 = vpop.f32.mrb[20].mxu1  ;;  %v1114_v60 = vpop.f32.mrb[21].mxu0 }
 0x120   :  { %v1115_v61 = vadd.f32 %v1114_v60, %v1113_v57  ;;  %v1178_v62 = vpop.f32.mrb[21].mxu1  ;;  %v1116_v0 = vpop.f32.mrb[22].mxu0 }
 0x121   :  { %v1179_v1 = vadd.f32 %v1178_v62, %v1177_v59  ;;  %v1180_v2 = vpop.f32.mrb[22].mxu1  ;;  %v1117_v4 = vpop.f32.mrb[23].mxu0 }
 0x122   :  { %v747_v5 = vadd.f32 %v1115_v61, %v204_v56  ;;  %v1118_v6 = vadd.f32 %v1117_v4, %v1116_v0  ;;  %v1181_v7 = vpop.f32.mrb[23].mxu1 }
 0x123   :  { %v1182_v9 = vadd.f32 %v1181_v7, %v1180_v2 }
 0x124   :  { %v750_v10 = vadd.f32 %v1118_v6, %v209_v8  ;;  %v844_v11 = vadd.f32 %v1179_v1, %v747_v5 }
 0x126   :  { %v1119_v13 = vpop.f32.mrb[24].mxu0  ;;  %v847_v14 = vadd.f32 %v1182_v9, %v750_v10 }
 0x127   :  { %v1183_v15 = vpop.f32.mrb[24].mxu1  ;;  %v1120_v16 = vpop.f32.mrb[25].mxu0 }
 0x128   :  { %v1121_v18 = vadd.f32 %v1120_v16, %v1119_v13  ;;  %v1184_v19 = vpop.f32.mrb[25].mxu1  ;;  %v1122_v21 = vpop.f32.mrb[26].mxu0 }
 0x129   :  { %v1185_v22 = vadd.f32 %v1184_v19, %v1183_v15  ;;  %v1186_v23 = vpop.f32.mrb[26].mxu1  ;;  %v1123_v24 = vpop.f32.mrb[27].mxu0 }
 0x12a   :  { %v755_v25 = vadd.f32 %v1121_v18, %v214_v12  ;;  %v1124_v26 = vadd.f32 %v1123_v24, %v1122_v21  ;;  %v1187_v27 = vpop.f32.mrb[27].mxu1 }
 0x12b   :  { %v1188_v29 = vadd.f32 %v1187_v27, %v1186_v23 }
 0x12c   :  { %v758_v30 = vadd.f32 %v1124_v26, %v219_v28  ;;  %v852_v31 = vadd.f32 %v1185_v22, %v755_v25 }
 0x12e   :  { %v1125_v33 = vpop.f32.mrb[28].mxu0  ;;  %v855_v34 = vadd.f32 %v1188_v29, %v758_v30 }
 0x12f   :  { %v1189_v36 = vpop.f32.mrb[28].mxu1  ;;  %v1126_v37 = vpop.f32.mrb[29].mxu0 }
 0x130   :  { %v1127_v39 = vadd.f32 %v1126_v37, %v1125_v33  ;;  %v1190_v40 = vpop.f32.mrb[29].mxu1  ;;  %v1128_v41 = vpop.f32.mrb[30].mxu0 }
 0x131   :  { %v1191_v42 = vadd.f32 %v1190_v40, %v1189_v36  ;;  %v1192_v43 = vpop.f32.mrb[30].mxu1  ;;  %v1129_v44 = vpop.f32.mrb[31].mxu0 }
 0x132   :  { %v763_v45 = vadd.f32 %v1127_v39, %v224_v32  ;;  %v1130_v47 = vadd.f32 %v1129_v44, %v1128_v41  ;;  %v1193_v48 = vpop.f32.mrb[31].mxu1 }
 0x133   :  { %v1194_v51 = vadd.f32 %v1193_v48, %v1192_v43 }
 0x134   :  { %v766_v52 = vadd.f32 %v1130_v47, %v229_v50  ;;  %v860_v53 = vadd.f32 %v1191_v42, %v763_v45 }
 0x136   :  { %v1217_v54 = vpop.f32.mrb[32].mxu0  ;;  %v863_v56 = vadd.f32 %v1194_v51, %v766_v52 }
 0x137   :  { %v909_v57 = vadd.f32 %v1217_v54, %v1643_v63  ;;  %v1225_v59 = vpop.f32.mrb[32].mxu1  ;;  %v900_v60 = vpop.f32.mrb[33].mxu0 }
 0x138   :  { %v941_v61 = vadd.f32 %v1225_v59, %v844_v11  ;;  %v901_v62 = vadd.f32 %v900_v60, %v1639_v46  ;;  %v932_v0 = vpop.f32.mrb[33].mxu1  ;;  %v1218_v1 = vpop.f32.mrb[34].mxu0 }
 0x139   :  { %965 = vst [vmem:[%s1720_s3 + $0x10] sm:$0xff] %v909_v57  ;;  %v933_v2 = vadd.f32 %v932_v0, %v1655_v55  ;;  %v912_v4 = vadd.f32 %v1218_v1, %v1645_v3  ;;  %v1226_v5 = vpop.f32.mrb[34].mxu1  ;;  %v903_v6 = vpop.f32.mrb[35].mxu0 }
 0x13a   :  { %973 = vst [vmem:[%s1720_s3 + $0x50] sm:$0xff] %v941_v61  ;;  %963 = vst [vmem:[%s1720_s3] sm:$0xff] %v901_v62  ;;  %v944_v46 = vadd.f32 %v1226_v5, %v847_v14  ;;  %v904_v63 = vadd.f32 %v903_v6, %v1641_v49  ;;  %v935_v7 = vpop.f32.mrb[35].mxu1 }
 0x13b   :  { %971 = vst [vmem:[%s1720_s3 + $0x40] sm:$0xff] %v933_v2  ;;  %966 = vst [vmem:[%s1720_s3 + $0x18] sm:$0xff] %v912_v4  ;;  %v936_v3 = vadd.f32 %v935_v7, %v1657_v58 }
 0x13c   :  { %974 = vst [vmem:[%s1720_s3 + $0x58] sm:$0xff] %v944_v46  ;;  %964 = vst [vmem:[%s1720_s3 + $0x8] sm:$0xff] %v904_v63 }
 0x13d   :  { %972 = vst [vmem:[%s1720_s3 + $0x48] sm:$0xff] %v936_v3 }
 0x13e   :  { %v1221_v49 = vpop.f32.mrb[36].mxu0 }
 0x13f   :  { %v925_v55 = vadd.f32 %v1221_v49, %v1651_v35  ;;  %v1229_v8 = vpop.f32.mrb[36].mxu1  ;;  %v916_v9 = vpop.f32.mrb[37].mxu0 }
 0x140   :  { %v957_v10 = vadd.f32 %v1229_v8, %v860_v53  ;;  %v917_v58 = vadd.f32 %v916_v9, %v1647_v17  ;;  %v948_v11 = vpop.f32.mrb[37].mxu1  ;;  %v1222_v12 = vpop.f32.mrb[38].mxu0 }
 0x141   :  { %969 = vst [vmem:[%s1720_s3 + $0x30] sm:$0xff] %v925_v55  ;;  %v949_v13 = vadd.f32 %v948_v11, %v852_v31  ;;  %v928_v14 = vadd.f32 %v1222_v12, %v1653_v38  ;;  %v1230_v15 = vpop.f32.mrb[38].mxu1  ;;  %v919_v16 = vpop.f32.mrb[39].mxu0 }
 0x142   :  { %977 = vst [vmem:[%s1720_s3 + $0x70] sm:$0xff] %v957_v10  ;;  %967 = vst [vmem:[%s1720_s3 + $0x20] sm:$0xff] %v917_v58  ;;  %v960_v17 = vadd.f32 %v1230_v15, %v863_v56  ;;  %v920_v35 = vadd.f32 %v919_v16, %v1649_v20  ;;  %v951_v18 = vpop.f32.mrb[39].mxu1 }
 0x143   :  { %975 = vst [vmem:[%s1720_s3 + $0x60] sm:$0xff] %v949_v13  ;;  %970 = vst [vmem:[%s1720_s3 + $0x38] sm:$0xff] %v928_v14  ;;  %v952_v38 = vadd.f32 %v951_v18, %v855_v34 }
 0x144   :  { %978 = vst [vmem:[%s1720_s3 + $0x78] sm:$0xff] %v960_v17  ;;  %968 = vst [vmem:[%s1720_s3 + $0x28] sm:$0xff] %v920_v35 }
 0x145   :  { %976 = vst [vmem:[%s1720_s3 + $0x68] sm:$0xff] %v952_v38 }

// kernel: convnet_forward.8
= control target key start
LH: loop header
LB: loop body
LE: loop exit
PB: predicated region body
PF: predicated region fallthrough
CT: control target
= control target key end

     0   :  { %v180_v0 = vmov 0.0   ;;  %vm181_vm0 = vmmov 0   ;;  %v182_v2 = vmov 0   ;;  %s236_s0 = inlined_call_operand.vmem [shape: bf16[128,128], index: 0, kind: input, shape index: {}]   ;;  %s237_s2 = inlined_call_operand.vmem [shape: f32[4,1], index: 2, kind: input, shape index: {}]   ;;  %s238_s1 = inlined_call_operand.vmem [shape: bf16[4,128], index: 1, kind: input, shape index: {}]   ;;  %s239_s3 = inlined_call_operand.vmem [shape: f32[4,128], index: 3, kind: output, shape index: {}]  }
   0x1   :  { %148 = vmatprep.subr.bf16.mxu0 %v180_v0  ;;  %v172_v1 = vld [vmem:[%s236_s0] sm:$0xff]   ;;  %164 = vmatprep.mubr.msk.bf16.mxu0 %vm181_vm0, %v180_v0  ;;  %v173_v3 = vld [vmem:[%s236_s0 + $0x8] sm:$0xff]   ;;  %v174_v4 = vld [vmem:[%s236_s0 + $0x10] sm:$0xff]  }
   0x2   :  { %171 = vset.pattern.permute.xlu0 %v182_v2  ;;  %149 = vmatpush3.bf16.msra.mxu0 %v172_v1  ;;  %v32_v5 = vld [vmem:[%s237_s2] sm:$0xf]  ;;  %v175_v6 = vld [vmem:[%s236_s0 + $0x18] sm:$0xff]   ;;  %v177_v8 = vld [vmem:[%s236_s0 + $0x28] sm:$0xff]  }
   0x3   :  { %150 = vmatprep.subr.bf16.mxu0 %v180_v0  ;;  %35 = vperm.xlu0 %171, %v32_v5   ;;  %v176_v7 = vld [vmem:[%s236_s0 + $0x20] sm:$0xff]   ;;  %v178_v9 = vld [vmem:[%s236_s0 + $0x30] sm:$0xff]   ;;  %v179_v10 = vld [vmem:[%s236_s0 + $0x38] sm:$0xff]  }
   0x4   :  { %v15_v11 = vld [vmem:[%s238_s1] sm:$0x3] }
   0x6   :  { %151 = vmatpush3.bf16.msra.mxu0 %v173_v3 }
   0x7   :  { %152 = vmatprep.subr.bf16.mxu0 %v180_v0 }
   0xa   :  { %153 = vmatpush3.bf16.msra.mxu0 %v174_v4 }
   0xb   :  { %154 = vmatprep.subr.bf16.mxu0 %v180_v0 }
   0xe   :  { %155 = vmatpush3.bf16.msra.mxu0 %v175_v6 }
   0xf   :  { %156 = vmatprep.subr.bf16.mxu0 %v180_v0 }
  0x12   :  { %157 = vmatpush3.bf16.msra.mxu0 %v176_v7 }
  0x13   :  { %158 = vmatprep.subr.bf16.mxu0 %v180_v0 }
  0x16   :  { %159 = vmatpush3.bf16.msra.mxu0 %v177_v8 }
  0x17   :  { %160 = vmatprep.subr.bf16.mxu0 %v180_v0 }
  0x1a   :  { %161 = vmatpush3.bf16.msra.mxu0 %v178_v9 }
  0x1b   :  { %162 = vmatprep.subr.bf16.mxu0 %v180_v0 }
  0x1e   :  { %163 = vmatpush3.bf16.msra.mxu0 %v179_v10 }
  0x21   :  { %165 = vmatmul.mubr.bf16.vlgmr.msra.gmra.mrb[0].mxu0 %v15_v11 }
  0x82   :  { %v36_v12 = vpop.permute.xlu0 %35 }
  0xf4   :  { %v120_v13 = vpop.f32.mrb[0].mxu0 }
  0xf5   :  { %v121_v14 = vadd.f32 %v120_v13, %v36_v12  ;;  %v166_v15 = vpop.f32.mrb[1].mxu0 }
  0xf6   :  { %v123_v16 = vpop.f32.mrb[2].mxu0 }
  0xf7   :  { %126 = vst [vmem:[%s239_s3] sm:$0xf] %v121_v14  ;;  %v167_v17 = vpop.f32.mrb[3].mxu0 }

// kernel: convnet_forward.9
= control target key start
LH: loop header
LB: loop body
LE: loop exit
PB: predicated region body
PF: predicated region fallthrough
CT: control target
= control target key end

     0   :  { %9 = vsyncpa [#allocation5], 0  ;;  %s610_s0 = inlined_call_operand.vmem [shape: f32[2,18,18], index: 0, kind: input, shape index: {}]   ;;  %s611_s1 = inlined_call_operand.vmem [shape: f32[9], index: 1, kind: input, shape index: {}]   ;;  %s612_s2 = inlined_call_operand.<no memory space> [shape: f32[1], index: 2, kind: input, shape index: {}]   ;;  %s613_s3 = inlined_call_operand.hbm [shape: f32[2,16,16], index: 3, kind: output, shape index: {}]  }
   0x1   :  { %10 = vsyncpa [#allocation4], 0  ;;  %s19_s14 = sshll.u32 %s611_s1, 4  ;;  %s20_s14 = int_to_ptr.vmem [resolvable:$true] %s19_s14 }
   0x2   :  { %s362_s15 = scalar_lea.vmem %s20_s14, 16  ;;  %p367_p1 = scmp.lt.s32.totalorder %s20_s14, %s20_s14 }
   0x3   :  { %p363_p0 = scmp.ne.s32.totalorder %s20_s14, %s362_s15  ;;  %p368_p2 = scmp.lt.s32.totalorder %s362_s15, %s362_s15 }
   0x5   :  { %p369_p3 = por %p368_p2, %p367_p1 }
   0x7   :  { %p370_p4 = pnand %p369_p3, %p363_p0 }
   0x9   :  { %373 = shalt.err (!%p370_p4)
}
   0xa   :  { %s400_s16 = smov [#allocation3]  }
   0xb   :  { %22 = dma.vmem_to_smem %s20_s14, 16, %s400_s16, [#allocation5]  }
   0xc   :  { %396 = dma.done.wait [#allocation5], 16  }
   0xd   :  { %397 = vsyncadd [#allocation5], 4294967280 }
   0xe   :  { %28 = sfence }
   0xf   :  { %s348_s17 = sld [smem:[#allocation3 + $0x1]]  ;;  %s349_s18 = sld [smem:[#allocation3 + $0x2]]  ;;  %v432_v0 = vld [vmem:[%s610_s0 + $0x18] sm:$0xff]  ;;  %v437_v1 = vld [vmem:[%s610_s0] sm:$0xff]  ;;  %v447_v4 = vld [vmem:[%s610_s0 + $0x8] sm:$0xff]  ;;  %vm114_vm0 = vcmask 1046528  }
  0x10   :  { %s351_s19 = sld [smem:[#allocation3 + $0x4]]  ;;  %v442_v3 = vld [vmem:[%s610_s0 + $0x20] sm:$0xff]  ;;  %s352_s27 = sld [smem:[#allocation3 + $0x5]]  ;;  %v458_v11 = vld [vmem:[%s610_s0 + $0x10] sm:$0x3]  ;;  %vm227_vm1 = vcmask 1045504  }
  0x11   :  { %s401_s28 = smov 127   ;;  %s354_s4 = sld [smem:[#allocation3 + $0x7]]  ;;  %v470_v17 = vld [vmem:[%s610_s0 + $0x28] sm:$0x3]  ;;  %vm326_vm2 = vcmask 130048  }
  0x12   :  { %s402_s7 = smov 126   ;;  %s485_s0 = sld [smem:[#allocation3 + $0x8]] }
  0x13   :  { %s487_s8 = sld [smem:[#allocation3 + $0x3]]  ;;  %s491_s9 = sld [smem:[#allocation3 + $0x6]] }
  0x14   :  { %s38_s10 = sld [smem:[#allocation3]] }
  0x15   :  { %v49_v2 = vstv %s348_s17  ;;  %v75_v9 = vstv %s349_s18 }
  0x16   :  { %v52_v5 = vmul.f32 %v49_v2, %v432_v0  ;;  %v50_v6 = vmul.f32 %v49_v2, %v437_v1  ;;  %v53_v7 = vmul.f32 %v49_v2, %v442_v3  ;;  %v51_v8 = vmul.f32 %v49_v2, %v447_v4 }
  0x17   :  { %v134_v10 = vstv %s351_s19  ;;  %v77_v12 = vmul.f32 %v75_v9, %v447_v4  ;;  %v76_v13 = vmul.f32 %v75_v9, %v437_v1  ;;  %v174_v18 = vstv %s352_s27 }
  0x18   :  { %62 = vrot.lane.b32.xlu1 %v52_v5, %s401_s28  ;;  %58 = vrot.lane.b32.xlu0 %v50_v6, %s401_s28  ;;  %v136_v14 = vmul.f32 %v134_v10, %v447_v4  ;;  %v137_v15 = vmul.f32 %v134_v10, %v458_v11  ;;  %v135_v16 = vmul.f32 %v134_v10, %v437_v1  ;;  %v247_v33 = vstv %s354_s4 }
  0x19   :  { %v79_v19 = vmul.f32 %v75_v9, %v442_v3  ;;  %v78_v20 = vmul.f32 %v75_v9, %v432_v0  ;;  %v139_v21 = vmul.f32 %v134_v10, %v442_v3  ;;  %v140_v23 = vmul.f32 %v134_v10, %v470_v17 }
  0x1a   :  { %v148_v22 = vrot.slane %v136_v14, 1  ;;  %v138_v24 = vmul.f32 %v134_v10, %v432_v0  ;;  %v176_v25 = vmul.f32 %v174_v18, %v447_v4  ;;  %v150_v26 = vrot.slane %v137_v15, 1 }
  0x1b   :  { %v147_v27 = vrot.slane %v135_v16, 1  ;;  %v177_v28 = vmul.f32 %v174_v18, %v458_v11  ;;  %v175_v29 = vmul.f32 %v174_v18, %v437_v1  ;;  %v179_v30 = vmul.f32 %v174_v18, %v442_v3 }
  0x1c   :  { %64 = vrot.lane.b32.xlu1 %v53_v7, %s401_s28  ;;  %60 = vrot.lane.b32.xlu0 %v51_v8, %s401_s28  ;;  %v180_v31 = vmul.f32 %v174_v18, %v470_v17  ;;  %v178_v32 = vmul.f32 %v174_v18, %v432_v0  ;;  %v153_v34 = vrot.slane %v139_v21, 1  ;;  %v155_v35 = vrot.slane %v140_v23, 1 }
  0x1d   :  { %v152_v36 = vrot.slane %v138_v24, 1  ;;  %v188_v37 = vrot.slane %v176_v25, 1  ;;  %v151_v38 = vsel %vm114_vm0, %v148_v22, %v150_v26  ;;  %v149_v39 = vsel %vm114_vm0, %v147_v27, %v148_v22 }
  0x1e   :  { %v190_v40 = vrot.slane %v177_v28, 1  ;;  %v187_v41 = vrot.slane %v175_v29, 1  ;;  %v193_v42 = vrot.slane %v179_v30, 1  ;;  %v195_v43 = vrot.slane %v180_v31, 1 }
  0x1f   :  { %v496_v44 = vmul.f32 %v247_v33, %v447_v4  ;;  %v250_v45 = vmul.f32 %v247_v33, %v458_v11  ;;  %v192_v46 = vrot.slane %v178_v32, 1  ;;  %v248_v47 = vmul.f32 %v247_v33, %v437_v1 }
  0x20   :  { %86 = vrot.lane.b32.xlu1 %v77_v12, %s402_s7  ;;  %84 = vrot.lane.b32.xlu0 %v76_v13, %s402_s7  ;;  %v156_v48 = vsel %vm114_vm0, %v153_v34, %v155_v35  ;;  %v154_v49 = vsel %vm114_vm0, %v152_v36, %v153_v34  ;;  %v191_v50 = vsel %vm114_vm0, %v188_v37, %v190_v40  ;;  %v101_v60 = vstv %s487_s8 }
  0x21   :  { %v189_v51 = vsel %vm114_vm0, %v187_v41, %v188_v37  ;;  %v252_v52 = vmul.f32 %v247_v33, %v442_v3  ;;  %v196_v53 = vsel %vm114_vm0, %v193_v42, %v195_v43  ;;  %v261_v54 = vrot.slane %v496_v44, 2 }
  0x22   :  { %v263_v55 = vrot.slane %v250_v45, 2  ;;  %v253_v56 = vmul.f32 %v247_v33, %v470_v17  ;;  %v194_v57 = vsel %vm114_vm0, %v192_v46, %v193_v42  ;;  %v260_v58 = vrot.slane %v248_v47, 2 }
  0x23   :  { %v251_v59 = vmul.f32 %v247_v33, %v432_v0  ;;  %v287_v61 = vstv %s485_s0  ;;  %v103_v62 = vmul.f32 %v101_v60, %v447_v4  ;;  %v104_v63 = vmul.f32 %v101_v60, %v458_v11 }
  0x24   :  { %90 = vrot.lane.b32.xlu1 %v79_v19, %s402_s7  ;;  %88 = vrot.lane.b32.xlu0 %v78_v20, %s402_s7  ;;  %v214_v2 = vstv %s491_s9  ;;  %v102_v5 = vmul.f32 %v101_v60, %v437_v1  ;;  %v106_v6 = vmul.f32 %v101_v60, %v442_v3  ;;  %v107_v7 = vmul.f32 %v101_v60, %v470_v17 }
  0x25   :  { %v105_v8 = vmul.f32 %v101_v60, %v432_v0  ;;  %v116_v9 = vrot.slane %v103_v62, 1  ;;  %v118_v10 = vrot.slane %v104_v63, 1  ;;  %v216_v12 = vmul.f32 %v214_v2, %v447_v4 }
  0x26   :  { %v217_v13 = vmul.f32 %v214_v2, %v458_v11  ;;  %v115_v14 = vrot.slane %v102_v5, 1  ;;  %v121_v15 = vrot.slane %v106_v6, 1  ;;  %v123_v16 = vrot.slane %v107_v7, 1 }
  0x27   :  { %v120_v18 = vrot.slane %v105_v8, 1  ;;  %v528_v19 = vsel %vm114_vm0, %v116_v9, %v118_v10  ;;  %v229_v20 = vrot.slane %v216_v12, 2  ;;  %v215_v22 = vmul.f32 %v214_v2, %v437_v1 }
  0x28   :  { %159 = vrot.lane.b32.xlu1 %v151_v38, %s401_s28  ;;  %157 = vrot.lane.b32.xlu0 %v149_v39, %s401_s28  ;;  %v231_v21 = vrot.slane %v217_v13, 2  ;;  %v532_v23 = vsel %vm114_vm0, %v115_v14, %v116_v9  ;;  %v535_v24 = vsel %vm114_vm0, %v121_v15, %v123_v16  ;;  %v219_v26 = vmul.f32 %v214_v2, %v442_v3 }
  0x29   :  { %v538_v25 = vsel %vm114_vm0, %v120_v18, %v121_v15  ;;  %v228_v28 = vrot.slane %v215_v22, 2  ;;  %v220_v29 = vmul.f32 %v214_v2, %v470_v17  ;;  %v218_v30 = vmul.f32 %v214_v2, %v432_v0 }
  0x2a   :  { %v542_v27 = vsel %vm227_vm1, %v229_v20, %v231_v21  ;;  %v264_v31 = vsel %vm227_vm1, %v261_v54, %v263_v55  ;;  %v266_v32 = vrot.slane %v252_v52, 2  ;;  %v268_v33 = vrot.slane %v253_v56, 2 }
  0x2b   :  { %v234_v34 = vrot.slane %v219_v26, 2  ;;  %v265_v35 = vrot.slane %v251_v59, 2  ;;  %v550_v36 = vsel %vm227_vm1, %v228_v28, %v229_v20  ;;  %v236_v37 = vrot.slane %v220_v29, 2 }
  0x2c   :  { %163 = vrot.lane.b32.xlu1 %v156_v48, %s401_s28  ;;  %161 = vrot.lane.b32.xlu0 %v154_v49, %s401_s28  ;;  %v233_v38 = vrot.slane %v218_v30, 2  ;;  %v262_v39 = vsel %vm227_vm1, %v260_v58, %v261_v54  ;;  %v289_v40 = vmul.f32 %v287_v61, %v447_v4  ;;  %v290_v41 = vmul.f32 %v287_v61, %v458_v11 }
  0x2d   :  { %v288_v42 = vmul.f32 %v287_v61, %v437_v1  ;;  %v557_v43 = vsel %vm227_vm1, %v234_v34, %v236_v37  ;;  %v269_v45 = vsel %vm227_vm1, %v266_v32, %v268_v33  ;;  %v267_v46 = vsel %vm227_vm1, %v265_v35, %v266_v32 }
  0x2e   :  { %v560_v44 = vsel %vm227_vm1, %v233_v38, %v234_v34  ;;  %v292_v47 = vmul.f32 %v287_v61, %v442_v3  ;;  %v293_v11 = vmul.f32 %v287_v61, %v470_v17  ;;  %v301_v48 = vrot.slane %v289_v40, 2 }
  0x2f   :  { %v303_v49 = vrot.slane %v290_v41, 2  ;;  %v39_v58 = vstv %s38_s10 }
  0x30   :  { %199 = vrot.lane.b32.xlu1 %v191_v50, %s402_s7  ;;  %197 = vrot.lane.b32.xlu0 %v189_v51, %s402_s7  ;;  %v300_v50 = vrot.slane %v288_v42, 2  ;;  %v291_v51 = vmul.f32 %v287_v61, %v432_v0  ;;  %v306_v52 = vrot.slane %v292_v47, 2  ;;  %v308_v55 = vrot.slane %v293_v11, 2 }
  0x31   :  { %v40_v59 = vmul.f32 %v39_v58, %v437_v1  ;;  %v41_v60 = vmul.f32 %v39_v58, %v447_v4  ;;  %v36_v61 = vstv %s612_s2  ;;  %v42_v2 = vmul.f32 %v39_v58, %v432_v0  ;;  %s403_s2 = smov [#allocation6]  }
  0x32   :  { %v302_v54 = vsel %vm227_vm1, %v300_v50, %v301_v48  ;;  %v305_v56 = vrot.slane %v291_v51, 2  ;;  %v309_v17 = vsel %vm227_vm1, %v306_v52, %v308_v55  ;;  %v43_v6 = vmul.f32 %v39_v58, %v442_v3  ;;  %s336_s13 = sshll.u32 %s403_s2, 4  ;;  %s337_s13 = int_to_ptr.vmem [resolvable:$true] %s336_s13 }
  0x33   :  { %v44_v5 = vadd.f32 %v40_v59, %v36_v61  ;;  %v45_v7 = vadd.f32 %v41_v60, %v36_v61  ;;  %v46_v10 = vadd.f32 %v42_v2, %v36_v61  ;;  %s374_s14 = scalar_lea.vmem %s337_s13, 512  ;;  %p379_p6 = scmp.lt.s32.totalorder %s337_s13, %s337_s13 }
  0x34   :  { %203 = vrot.lane.b32.xlu1 %v196_v53, %s402_s7  ;;  %201 = vrot.lane.b32.xlu0 %v194_v57, %s402_s7  ;;  %v304_v53 = vsel %vm227_vm1, %v301_v48, %v303_v49  ;;  %v307_v57 = vsel %vm227_vm1, %v305_v56, %v306_v52  ;;  %v47_v13 = vadd.f32 %v43_v6, %v36_v61  ;;  %p375_p5 = scmp.ne.s32.totalorder %s337_s13, %s374_s14  ;;  %p380_p7 = scmp.lt.s32.totalorder %s374_s14, %s374_s14 }
  0x36   :  { %p381_p8 = por %p380_p7, %p379_p6 }
  0x38   :  { %272 = vrot.lane.b32.xlu1 %v264_v31, %s401_s28  ;;  %270 = vrot.lane.b32.xlu0 %v262_v39, %s401_s28  ;;  %p382_p9 = pnand %p381_p8, %p375_p5 }
  0x3c   :  { %276 = vrot.lane.b32.xlu1 %v269_v45, %s401_s28  ;;  %274 = vrot.lane.b32.xlu0 %v267_v46, %s401_s28 }
  0x40   :  { %312 = vrot.lane.b32.xlu1 %v304_v53, %s402_s7  ;;  %310 = vrot.lane.b32.xlu0 %v302_v54, %s402_s7 }
  0x44   :  { %316 = vrot.lane.b32.xlu1 %v309_v17, %s402_s7  ;;  %314 = vrot.lane.b32.xlu0 %v307_v57, %s402_s7 }
  0x8a   :  { %v63_v62 = vpop.permute.xlu1 %62  ;;  %v59_v63 = vpop.permute.xlu0 %58 }
  0x8b   :  { %v70_v12 = vadd.f32 %v59_v63, %v44_v5  ;;  %v72_v18 = vadd.f32 %v63_v62, %v46_v10 }
  0x8e   :  { %v65_v8 = vpop.permute.xlu1 %64  ;;  %v61_v9 = vpop.permute.xlu0 %60 }
  0x8f   :  { %v71_v1 = vadd.f32 %v61_v9, %v45_v7  ;;  %v73_v20 = vadd.f32 %v65_v8, %v47_v13 }
  0x92   :  { %v87_v14 = vpop.permute.xlu1 %86  ;;  %v85_v4 = vpop.permute.xlu0 %84 }
  0x93   :  { %v97_v15 = vadd.f32 %v87_v14, %v71_v1  ;;  %v96_v16 = vadd.f32 %v85_v4, %v70_v12 }
  0x95   :  { %v130_v21 = vadd.f32 %v528_v19, %v97_v15  ;;  %v129_v0 = vadd.f32 %v532_v23, %v96_v16 }
  0x96   :  { %v91_v22 = vpop.permute.xlu1 %90  ;;  %v89_v26 = vpop.permute.xlu0 %88 }
  0x97   :  { %v99_v3 = vadd.f32 %v91_v22, %v73_v20  ;;  %v98_v28 = vadd.f32 %v89_v26, %v72_v18 }
  0x99   :  { %v132_v29 = vadd.f32 %v535_v24, %v99_v3  ;;  %v131_v30 = vadd.f32 %v538_v25, %v98_v28 }
  0x9a   :  { %v160_v31 = vpop.permute.xlu1 %159  ;;  %v158_v32 = vpop.permute.xlu0 %157 }
  0x9b   :  { %v170_v35 = vadd.f32 %v160_v31, %v130_v21  ;;  %v169_v37 = vadd.f32 %v158_v32, %v129_v0 }
  0x9e   :  { %v164_v33 = vpop.permute.xlu1 %163  ;;  %v162_v34 = vpop.permute.xlu0 %161 }
  0x9f   :  { %v172_v41 = vadd.f32 %v164_v33, %v132_v29  ;;  %v171_v23 = vadd.f32 %v162_v34, %v131_v30 }
  0xa2   :  { %v200_v38 = vpop.permute.xlu1 %199  ;;  %v198_v39 = vpop.permute.xlu0 %197 }
  0xa3   :  { %v210_v40 = vadd.f32 %v200_v38, %v170_v35  ;;  %v209_v19 = vadd.f32 %v198_v39, %v169_v37 }
  0xa5   :  { %v243_v42 = vadd.f32 %v542_v27, %v210_v40  ;;  %v242_v45 = vadd.f32 %v550_v36, %v209_v19 }
  0xa6   :  { %v204_v46 = vpop.permute.xlu1 %203  ;;  %v202_v24 = vpop.permute.xlu0 %201 }
  0xa7   :  { %v212_v47 = vadd.f32 %v204_v46, %v172_v41  ;;  %v211_v25 = vadd.f32 %v202_v24, %v171_v23 }
  0xa9   :  { %v245_v11 = vadd.f32 %v557_v43, %v212_v47  ;;  %v244_v48 = vadd.f32 %v560_v44, %v211_v25 }
  0xaa   :  { %v273_v49 = vpop.permute.xlu1 %272  ;;  %v271_v50 = vpop.permute.xlu0 %270 }
  0xab   :  { %v283_v53 = vadd.f32 %v273_v49, %v243_v42  ;;  %v282_v54 = vadd.f32 %v271_v50, %v242_v45 }
  0xae   :  { %v277_v51 = vpop.permute.xlu1 %276  ;;  %v275_v52 = vpop.permute.xlu0 %274 }
  0xaf   :  { %v285_v36 = vadd.f32 %v277_v51, %v245_v11  ;;  %v284_v57 = vadd.f32 %v275_v52, %v244_v48 }
  0xb2   :  { %v313_v55 = vpop.permute.xlu1 %312  ;;  %v311_v56 = vpop.permute.xlu0 %310 }
  0xb3   :  { %v323_v27 = vadd.f32 %v313_v55, %v283_v53  ;;  %v322_v17 = vadd.f32 %v311_v56, %v282_v54 }
  0xb5   :  { %328 = vst.msk [vmem:[#allocation6 + $0x8] sm:$0xff] %vm326_vm2, %v323_v27  ;;  %327 = vst.msk [vmem:[#allocation6] sm:$0xff] %vm326_vm2, %v322_v17 }
  0xb6   :  { %v317_v43 = vpop.permute.xlu1 %316  ;;  %v315_v44 = vpop.permute.xlu0 %314 }
  0xb7   :  { %v325_v58 = vadd.f32 %v317_v43, %v285_v36  ;;  %v324_v59 = vadd.f32 %v315_v44, %v284_v57 }
  0xb9   :  { %330 = vst.msk [vmem:[#allocation6 + $0x18] sm:$0xff] %vm326_vm2, %v325_v58  ;;  %329 = vst.msk [vmem:[#allocation6 + $0x10] sm:$0xff] %vm326_vm2, %v324_v59 }
  0xba   :  { %385 = shalt.err (!%p382_p9)
}
  0xbb   :  { %s386_s17 = scalar_lea.hbm %s613_s3, 512 }
  0xbc   :  { %p387_p10 = scmp.ne.s32.totalorder %s613_s3, %s386_s17  ;;  %p390_p11 = scmp.lt.u32.totalorder %s386_s17, %s613_s3 }
  0xbe   :  { %p392_p12 = pnand %p390_p11, %p387_p10 }
  0xc0   :  { %395 = shalt.err (!%p392_p12)
}
  0xc1   :  { %s404_s1 = smov 128   ;;  %s405_s22 = smov 8  }
  0xc2   :  { %342 = dma.vmem_to_hbm [thread:$0]  %s337_s13, 512, %s613_s3, [#allocation4], %s404_s1, %s404_s1, %s405_s22  }
  0xc3   :  { %398 = dma.done.wait [#allocation4], 512  }
  0xc4   :  { %399 = vsyncadd [#allocation4], 4294966784 }
  0xc5   :  { %346 = vsyncpa [#allocation4], 1 }
  0xc6   :  { %347 = vsyncpa [#allocation5], 1 }

</bundles_post_ra>
